<compile_context>
chip_gen: v7x
topology: tpu7x:2x2x1
jax: 0.10.0
libtpu: 0.0.40
codegen_flags: <defaults>
</compile_context>

<pallas_src>
import math

import jax
import jax.numpy as jnp
from jax import lax
from jax.experimental import pallas as pl
from jax.experimental.pallas import tpu as pltpu


# --------------------------------------------------------------------------
# Small helpers
# --------------------------------------------------------------------------

def _round_up(x, m):
    return ((x + m - 1) // m) * m


def _rows_tiling(n_rows, target_tm=1024, min_grid=2):
    """Pick a row tile (multiple of 8) and the padded row count.

    Large tiles amortize the ~0.35us per-grid-step overhead; the tile is only
    shrunk to guarantee >= min_grid grid steps (megacore / v7x: 2 TCs)."""
    tm = max(8, min(_round_up(target_tm, 8), _round_up(n_rows, 8)))
    while tm > 8 and -(-n_rows // tm) < min_grid:
        tm = max(8, _round_up(tm // 2, 8))
    n_pad = _round_up(n_rows, tm)
    return tm, n_pad


def _gelu_exact(x):
    # Matches torch.nn.GELU() (erf formulation); computed in f32.
    return 0.5 * x * (1.0 + lax.erf(x * (1.0 / math.sqrt(2.0))))


# --------------------------------------------------------------------------
# Fused Pallas kernel: spectrogram + initial MLP + final MLP + whisper norm
# --------------------------------------------------------------------------

def _fused_forward_kernel(frames_ref,        # [tm, C*n_fft]       f32
                          wdft_ref,          # [C*n_fft, 2*C*M]    bf16 (win+norm folded)
                          w1_ref, b1_ref,    # [C*M, M*H] bf16, [1, M*H] f32
                          w2_ref, b2_ref,    # [M*H, M*H] bf16, [1, M*H] f32
                          wf1_ref, bf1_ref,  # [F, 2F]    bf16, [1, 2F]  f32
                          wf2_ref, bf2_ref,  # [2F, 128]  bf16, [1, 128] f32
                          o_ref):            # [tm, 128]           f32
    # Windowed, normalized DFT -> power -> log1p (one bf16 matmul, f32 acc).
    f = frames_ref[...].astype(jnp.bfloat16)
    reim = jnp.dot(f, wdft_ref[...], preferred_element_type=jnp.float32)
    half = reim.shape[-1] // 2
    re = reim[:, :half]
    im = reim[:, half:]
    spec = jnp.log1p(re * re + im * im)                    # [tm, C*M] f32

    # initial_linear: Conv1d(C,H,1) -> GELU -> Conv1d(H,H,1), expressed as
    # lane-dense structured matmuls on the flat (c*M+m) -> (m*H+h) feature axis
    # (the K=4 channel mix is folded into w1_big, never a lane-sparse tile).
    h = jnp.dot(spec.astype(jnp.bfloat16), w1_ref[...],
                preferred_element_type=jnp.float32) + b1_ref[...]
    h = _gelu_exact(h)
    x = jnp.dot(h.astype(jnp.bfloat16), w2_ref[...],
                preferred_element_type=jnp.float32) + b2_ref[...]   # [tm, F]

    # TODO(synk): SpectralConvSequence ('encoders') source is not provided;
    # with cnn_channels=[H, H] it is treated as identity here.

    # final: Conv1d(F,2F,1) -> GELU -> ConvTranspose1d(2F,O,1,1,0) -> whisper
    # normalization. wf2 is zero-padded to 128 lanes so the store is unmasked.
    h2 = jnp.dot(x.astype(jnp.bfloat16), wf1_ref[...],
                 preferred_element_type=jnp.float32) + bf1_ref[...]
    h2 = _gelu_exact(h2)
    y = jnp.dot(h2.astype(jnp.bfloat16), wf2_ref[...],
                preferred_element_type=jnp.float32) + bf2_ref[...]
    o_ref[...] = 1.25 * jnp.tanh(y) + 0.75                  # padded lanes -> 0.75, sliced away


def pallas_spectral_forward_rows(frames_rows, kernel_params, *,
                                 out_width, target_tm=1024):
    """frames_rows: [R, C*n_fft] f32, one row per (batch, frame) position.

    Returns [R, out_width] f32 (lane-dense padded output; caller slices the
    real out_channels)."""
    R, CN = frames_rows.shape
    tm, R_pad = _rows_tiling(R, target_tm)
    if R_pad != R:
        frames_rows = jnp.pad(frames_rows, ((0, R_pad - R), (0, 0)))

    def _replicated(arr):
        nd = arr.ndim
        return pl.BlockSpec(arr.shape, lambda *_: (0,) * nd)

    out = pl.pallas_call(
        _fused_forward_kernel,
        out_shape=jax.ShapeDtypeStruct((R_pad, out_width), jnp.float32),
        grid=(R_pad // tm,),
        in_specs=[pl.BlockSpec((tm, CN), lambda i: (i, 0))]
                 + [_replicated(p) for p in kernel_params],
        out_specs=pl.BlockSpec((tm, out_width), lambda i: (i, 0)),
        compiler_params=pltpu.CompilerParams(
            dimension_semantics=("parallel",),
            vmem_limit_bytes=32 * 1024 * 1024),
    )(frames_rows, *kernel_params)
    return out[:R]


# --------------------------------------------------------------------------
# Model: parameters + forward
# --------------------------------------------------------------------------

class SpectralConvPallas:
    """Minimal-path SpectralConv (inference) with a fully fused Pallas forward."""

    def __init__(self, *, in_channels=4, bins=8, hop_length=8,
                 initial_linear=32, out_channels=6, seed=0,
                 out_lane_width=128, target_row_tile=1024):
        self.in_channels = in_channels
        self.bins = bins
        self.hop_length = hop_length
        self.n_fft = bins * 2
        self.hidden = initial_linear
        self.out_channels = out_channels
        self.out_lane_width = out_lane_width
        self.target_row_tile = target_row_tile

        C, H, M, N = in_channels, self.hidden, bins, self.n_fft
        F, O = H * M, out_channels

        # ---- canonical parameters (PyTorch layouts; synthetic init) --------
        key = jax.random.PRNGKey(seed)
        ks = jax.random.split(key, 8)

        def _w(k, fan_in, shape):
            return jax.random.normal(k, shape, jnp.float32) / math.sqrt(fan_in)

        # initial_linear = Conv1d(C,H,1) -> GELU -> Conv1d(H,H,1)
        self.w_init1 = _w(ks[0], C, (C, H))
        self.b_init1 = _w(ks[1], C, (1, H)) * 0.1
        self.w_init2 = _w(ks[2], H, (H, H))
        self.b_init2 = _w(ks[3], H, (1, H)) * 0.1
        # final = Conv1d(F,2F,1) -> GELU -> ConvTranspose1d(2F,O,1,1,0)
        self.w_fin1 = _w(ks[4], F, (F, 2 * F))
        self.b_fin1 = _w(ks[5], F, (1, 2 * F)) * 0.1
        self.w_fin2 = _w(ks[6], 2 * F, (2 * F, O))
        self.b_fin2 = _w(ks[7], 2 * F, (1, O)) * 0.1

        # ---- kernel-layout constants (built once on the host) --------------
        # torchaudio T.Spectrogram(n_fft=2*bins, hop_length, normalized=True,
        # power=2): periodic Hann window, center=True reflect pad, power
        # divided by sum(win^2); only bins [:M] and frames [:T] are used.
        n = jnp.arange(N, dtype=jnp.float32)
        kf = jnp.arange(M, dtype=jnp.float32)
        win = 0.5 * (1.0 - jnp.cos(2.0 * jnp.pi * n / N))           # periodic Hann
        scale = 1.0 / jnp.sqrt(jnp.sum(win * win))                  # normalized=True
        ang = 2.0 * jnp.pi * n[:, None] * kf[None, :] / N
        wcos = win[:, None] * jnp.cos(ang) * scale                  # [N, M]
        wsin = win[:, None] * jnp.sin(ang) * scale                  # [N, M]
        # Block-diagonal over channels; frame rows are flattened in (n, c)
        # order, spectrogram columns in (c, m) order, re | im concatenated.
        eye_c = jnp.eye(C, dtype=jnp.float32)
        cos_big = (eye_c[None, :, :, None] * wcos[:, None, None, :]).reshape(N * C, C * M)
        sin_big = (eye_c[None, :, :, None] * wsin[:, None, None, :]).reshape(N * C, C * M)
        wdft = jnp.concatenate([cos_big, sin_big], axis=1)          # [C*N, 2*C*M]

        # initial_linear folded to act on the flat (c*M+m) -> (m*H+h) axis.
        eye_m = jnp.eye(M, dtype=jnp.float32)
        w1_big = (eye_m[None, :, :, None] * self.w_init1[:, None, None, :]
                  ).reshape(C * M, M * H)                           # [C*M, M*H]
        b1_big = jnp.tile(self.b_init1, (1, M))                     # [1, M*H]
        w2_big = (eye_m[:, None, :, None] * self.w_init2[None, :, None, :]
                  ).reshape(M * H, M * H)                           # block-diagonal
        b2_big = jnp.tile(self.b_init2, (1, M))
        # Reference final conv expects feature order f = h*M + m; the kernel
        # produces q = m*H + h, so permute the weight rows once on the host.
        wf1_k = self.w_fin1.reshape(H, M, 2 * F).transpose(1, 0, 2).reshape(F, 2 * F)
        # Pad the 6-wide output projection to a lane-dense width (128).
        wf2_p = jnp.zeros((2 * F, out_lane_width), jnp.float32).at[:, :O].set(self.w_fin2)
        bf2_p = jnp.zeros((1, out_lane_width), jnp.float32).at[:, :O].set(self.b_fin2)

        bf16 = jnp.bfloat16
        self._kernel_params = (
            wdft.astype(bf16),
            w1_big.astype(bf16), b1_big,
            w2_big.astype(bf16), b2_big,
            wf1_k.astype(bf16), self.b_fin1,
            wf2_p.astype(bf16), bf2_p,
        )

    # ---- framing (center=True reflect pad; window folded into the kernel) --
    def _frames_rows(self, x):
        """x: [B, C, Tsamp] -> ([B*T, n_fft*C] un-windowed frame rows, T)."""
        B, C, Tsamp = x.shape
        T = Tsamp // self.hop_length
        pad = self.n_fft // 2
        xt = jnp.transpose(x, (0, 2, 1))                           # [B, Tsamp, C] (input-sized)
        xp = jnp.pad(xt, ((0, 0), (pad, pad), (0, 0)), mode="reflect")
        idx = (jnp.arange(T) * self.hop_length)[:, None] + jnp.arange(self.n_fft)[None, :]
        frames = xp[:, idx, :]                                     # [B, T, n_fft, C]
        return frames.reshape(B * T, self.n_fft * C), T            # inner order (n, c)

    # ---- forward ------------------------------------------------------------
    def forward(self, x_list, recording=None, conditions=None, mel=None,
                train=False, return_hidden_outputs=False):
        frame_rows, total_b, T = [], 0, None
        for x_i in x_list:
            rows_i, T_i = self._frames_rows(x_i)
            if T is None:
                T = T_i
            assert T_i == T, "all entries must share the same number of frames"
            frame_rows.append(rows_i)
            total_b += x_i.shape[0]
        rows = frame_rows[0] if len(frame_rows) == 1 else jnp.concatenate(frame_rows, axis=0)

        out_pad = pallas_spectral_forward_rows(
            rows, self._kernel_params,
            out_width=self.out_lane_width, target_tm=self.target_row_tile)
        out = out_pad[:, :self.out_channels].reshape(total_b, T, self.out_channels)
        out = jnp.transpose(out, (0, 2, 1))        # only the tiny [B, T, O] transpose remains

        quantizer_metrics = None
        channel_weights = []
        # TODO(synk): SpectralConvSequence ('encoders') source is not provided;
        # treated as identity, so hidden_outputs stays empty.
        hidden_outputs = []
        return out, quantizer_metrics, channel_weights, hidden_outputs


# --------------------------------------------------------------------------
# Pure-JAX (f32) mirror of the module's minimal path, for correctness check
# --------------------------------------------------------------------------

def _reference_forward(model, x):
    B, C, Tsamp = x.shape
    M, H, N, hop = model.bins, model.hidden, model.n_fft, model.hop_length
    T = Tsamp // hop
    pad = N // 2
    xp = jnp.pad(x, ((0, 0), (0, 0), (pad, pad)), mode="reflect")
    n = jnp.arange(N, dtype=jnp.float32)
    win = 0.5 * (1.0 - jnp.cos(2.0 * jnp.pi * n / N))
    idx = (jnp.arange(T) * hop)[:, None] + jnp.arange(N)[None, :]
    frames = xp[:, :, idx] * win                                   # [B, C, T, N]
    k = jnp.arange(M, dtype=jnp.float32)
    ang = 2.0 * jnp.pi * n[:, None] * k[None, :] / N
    re = jnp.einsum("bctn,nm->bctm", frames, jnp.cos(ang))
    im = jnp.einsum("bctn,nm->bctm", frames, jnp.sin(ang))
    spec = jnp.log1p((re * re + im * im) / jnp.sum(win * win))     # [B, C, T, M]
    x1 = jnp.transpose(spec, (0, 1, 3, 2)).reshape(B, C, M * T)

    def conv1x1(z, w, b):          # z: [B, Cin, L], w: [Cin, Cout], b: [1, Cout]
        return jnp.einsum("bil,io->bol", z, w) + b[0][None, :, None]

    h = _gelu_exact(conv1x1(x1, model.w_init1, model.b_init1))
    h = conv1x1(h, model.w_init2, model.b_init2)                   # [B, H, M*T]
    z = h.reshape(B, H, M, T).reshape(B, H * M, T)                 # encoders = identity
    g = _gelu_exact(conv1x1(z, model.w_fin1, model.b_fin1))
    y = conv1x1(g, model.w_fin2, model.b_fin2)
    return 1.25 * jnp.tanh(y) + 0.75                               # [B, O, T]


# --------------------------------------------------------------------------
# Demo
# --------------------------------------------------------------------------

if __name__ == "__main__":
    key = jax.random.PRNGKey(0)
    B, C, Tsamp = 2, 4, 128          # MEG scan [B, C, T] (single recording group)
    x0 = jax.random.normal(key, (B, C, Tsamp), jnp.float32)

    model = SpectralConvPallas(in_channels=C, bins=8, hop_length=8,
                               initial_linear=32, out_channels=6, seed=0)

    out, qmetrics, ch_w, hidden = model.forward([x0], recording=[None],
                                                conditions=[{}])
    out = jax.block_until_ready(out)

    expected_T = Tsamp // model.hop_length
    assert out.shape == (B, model.out_channels, expected_T), out.shape
    assert bool(jnp.all(jnp.isfinite(out)))

    # Correctness vs a pure-f32 JAX mirror of the module's minimal path.
    # Loose tolerance because the kernel uses bf16 matmul operands
    # (f32 accumulation) while the reference is all-f32.
    ref = jax.block_until_ready(_reference_forward(model, x0))
    max_err = float(jnp.max(jnp.abs(out - ref)))
    assert max_err < 0.25, f"kernel vs reference mismatch: max_err={max_err}"

    print("KERNEL_OK")
</pallas_src>

<mosaic_0001>
module attributes {stable_mosaic.version = 11 : i64} {
  func.func @_fused_forward_kernel(%arg0: i32, %arg1: memref<16x64xf32, #tpu.memory_space<vmem>>, %arg2: memref<64x64xbf16, #tpu.memory_space<vmem>>, %arg3: memref<32x256xbf16, #tpu.memory_space<vmem>>, %arg4: memref<1x256xf32, #tpu.memory_space<vmem>>, %arg5: memref<256x256xbf16, #tpu.memory_space<vmem>>, %arg6: memref<1x256xf32, #tpu.memory_space<vmem>>, %arg7: memref<256x512xbf16, #tpu.memory_space<vmem>>, %arg8: memref<1x512xf32, #tpu.memory_space<vmem>>, %arg9: memref<512x128xbf16, #tpu.memory_space<vmem>>, %arg10: memref<1x128xf32, #tpu.memory_space<vmem>>, %arg11: memref<16x128xf32, #tpu.memory_space<vmem>>) attributes {dimension_semantics = [#tpu.dimension_semantics<parallel>], iteration_bounds = array<i64: 2>, scalar_prefetch = 0 : i64, scratch_operands = 0 : i64, tpu.core_type = #tpu.core_type<tc>, window_params = [{transform_indices = @transform_0, window_bounds = array<i64: 16, 64>}, {pipeline_mode = #tpu.pipeline_mode<synchronous>, transform_indices = @transform_1, window_bounds = array<i64: 64, 64>}, {pipeline_mode = #tpu.pipeline_mode<synchronous>, transform_indices = @transform_2, window_bounds = array<i64: 32, 256>}, {pipeline_mode = #tpu.pipeline_mode<synchronous>, transform_indices = @transform_3, window_bounds = array<i64: 1, 256>}, {pipeline_mode = #tpu.pipeline_mode<synchronous>, transform_indices = @transform_4, window_bounds = array<i64: 256, 256>}, {pipeline_mode = #tpu.pipeline_mode<synchronous>, transform_indices = @transform_5, window_bounds = array<i64: 1, 256>}, {pipeline_mode = #tpu.pipeline_mode<synchronous>, transform_indices = @transform_6, window_bounds = array<i64: 256, 512>}, {pipeline_mode = #tpu.pipeline_mode<synchronous>, transform_indices = @transform_7, window_bounds = array<i64: 1, 512>}, {pipeline_mode = #tpu.pipeline_mode<synchronous>, transform_indices = @transform_8, window_bounds = array<i64: 512, 128>}, {pipeline_mode = #tpu.pipeline_mode<synchronous>, transform_indices = @transform_9, window_bounds = array<i64: 1, 128>}, {transform_indices = @transform_10, window_bounds = array<i64: 16, 128>}]} {
    %c0 = arith.constant 0 : index
    %c0_0 = arith.constant 0 : index
    %0 = vector.load %arg1[%c0, %c0_0] : memref<16x64xf32, #tpu.memory_space<vmem>>, vector<16x64xf32>
    %1 = arith.truncf %0 : vector<16x64xf32> to vector<16x64xbf16>
    %c0_1 = arith.constant 0 : index
    %c0_2 = arith.constant 0 : index
    %2 = vector.load %arg2[%c0_1, %c0_2] : memref<64x64xbf16, #tpu.memory_space<vmem>>, vector<64x64xbf16>
    %cst = arith.constant dense<0.000000e+00> : vector<16x64xf32>
    %3 = tpu.matmul %1, %2, %cst {dimension_numbers = #tpu.dot_dimension_numbers<[1], [0], [0], [1], [0, 0, 1, 1], [], []>} : vector<16x64xbf16>, vector<64x64xbf16>, vector<16x64xf32> -> vector<16x64xf32>
    %4 = vector.extract_strided_slice %3 {offsets = [0, 0], sizes = [16, 32], strides = [1, 1]} : vector<16x64xf32> to vector<16x32xf32>
    %5 = vector.extract_strided_slice %3 {offsets = [0, 32], sizes = [16, 32], strides = [1, 1]} : vector<16x64xf32> to vector<16x32xf32>
    %6 = arith.mulf %4, %4 : vector<16x32xf32>
    %7 = arith.mulf %5, %5 : vector<16x32xf32>
    %8 = arith.addf %6, %7 : vector<16x32xf32>
    %9 = math.log1p %8 : vector<16x32xf32>
    %10 = arith.truncf %9 : vector<16x32xf32> to vector<16x32xbf16>
    %c0_3 = arith.constant 0 : index
    %c0_4 = arith.constant 0 : index
    %11 = vector.load %arg3[%c0_3, %c0_4] : memref<32x256xbf16, #tpu.memory_space<vmem>>, vector<32x256xbf16>
    %cst_5 = arith.constant dense<0.000000e+00> : vector<16x256xf32>
    %12 = tpu.matmul %10, %11, %cst_5 {dimension_numbers = #tpu.dot_dimension_numbers<[1], [0], [0], [1], [0, 0, 1, 1], [], []>} : vector<16x32xbf16>, vector<32x256xbf16>, vector<16x256xf32> -> vector<16x256xf32>
    %c0_6 = arith.constant 0 : index
    %c0_7 = arith.constant 0 : index
    %13 = vector.load %arg4[%c0_6, %c0_7] : memref<1x256xf32, #tpu.memory_space<vmem>>, vector<1x256xf32>
    %14 = vector.broadcast %13 : vector<1x256xf32> to vector<16x256xf32>
    %15 = arith.addf %12, %14 : vector<16x256xf32>
    %cst_8 = arith.constant 5.000000e-01 : f32
    %16 = vector.broadcast %cst_8 : f32 to vector<16x256xf32>
    %17 = arith.mulf %16, %15 : vector<16x256xf32>
    %cst_9 = arith.constant 0.707106769 : f32
    %18 = vector.broadcast %cst_9 : f32 to vector<16x256xf32>
    %19 = arith.mulf %15, %18 : vector<16x256xf32>
    %20 = math.erf %19 : vector<16x256xf32>
    %cst_10 = arith.constant 1.000000e+00 : f32
    %21 = vector.broadcast %cst_10 : f32 to vector<16x256xf32>
    %22 = arith.addf %21, %20 : vector<16x256xf32>
    %23 = arith.mulf %17, %22 : vector<16x256xf32>
    %24 = arith.truncf %23 : vector<16x256xf32> to vector<16x256xbf16>
    %c0_11 = arith.constant 0 : index
    %c0_12 = arith.constant 0 : index
    %25 = vector.load %arg5[%c0_11, %c0_12] : memref<256x256xbf16, #tpu.memory_space<vmem>>, vector<256x256xbf16>
    %cst_13 = arith.constant dense<0.000000e+00> : vector<16x256xf32>
    %26 = tpu.matmul %24, %25, %cst_13 {dimension_numbers = #tpu.dot_dimension_numbers<[1], [0], [0], [1], [0, 0, 1, 1], [], []>} : vector<16x256xbf16>, vector<256x256xbf16>, vector<16x256xf32> -> vector<16x256xf32>
    %c0_14 = arith.constant 0 : index
    %c0_15 = arith.constant 0 : index
    %27 = vector.load %arg6[%c0_14, %c0_15] : memref<1x256xf32, #tpu.memory_space<vmem>>, vector<1x256xf32>
    %28 = vector.broadcast %27 : vector<1x256xf32> to vector<16x256xf32>
    %29 = arith.addf %26, %28 : vector<16x256xf32>
    %30 = arith.truncf %29 : vector<16x256xf32> to vector<16x256xbf16>
    %c0_16 = arith.constant 0 : index
    %c0_17 = arith.constant 0 : index
    %31 = vector.load %arg7[%c0_16, %c0_17] : memref<256x512xbf16, #tpu.memory_space<vmem>>, vector<256x512xbf16>
    %cst_18 = arith.constant dense<0.000000e+00> : vector<16x512xf32>
    %32 = tpu.matmul %30, %31, %cst_18 {dimension_numbers = #tpu.dot_dimension_numbers<[1], [0], [0], [1], [0, 0, 1, 1], [], []>} : vector<16x256xbf16>, vector<256x512xbf16>, vector<16x512xf32> -> vector<16x512xf32>
    %c0_19 = arith.constant 0 : index
    %c0_20 = arith.constant 0 : index
    %33 = vector.load %arg8[%c0_19, %c0_20] : memref<1x512xf32, #tpu.memory_space<vmem>>, vector<1x512xf32>
    %34 = vector.broadcast %33 : vector<1x512xf32> to vector<16x512xf32>
    %35 = arith.addf %32, %34 : vector<16x512xf32>
    %cst_21 = arith.constant 5.000000e-01 : f32
    %36 = vector.broadcast %cst_21 : f32 to vector<16x512xf32>
    %37 = arith.mulf %36, %35 : vector<16x512xf32>
    %cst_22 = arith.constant 0.707106769 : f32
    %38 = vector.broadcast %cst_22 : f32 to vector<16x512xf32>
    %39 = arith.mulf %35, %38 : vector<16x512xf32>
    %40 = math.erf %39 : vector<16x512xf32>
    %cst_23 = arith.constant 1.000000e+00 : f32
    %41 = vector.broadcast %cst_23 : f32 to vector<16x512xf32>
    %42 = arith.addf %41, %40 : vector<16x512xf32>
    %43 = arith.mulf %37, %42 : vector<16x512xf32>
    %44 = arith.truncf %43 : vector<16x512xf32> to vector<16x512xbf16>
    %c0_24 = arith.constant 0 : index
    %c0_25 = arith.constant 0 : index
    %45 = vector.load %arg9[%c0_24, %c0_25] : memref<512x128xbf16, #tpu.memory_space<vmem>>, vector<512x128xbf16>
    %cst_26 = arith.constant dense<0.000000e+00> : vector<16x128xf32>
    %46 = tpu.matmul %44, %45, %cst_26 {dimension_numbers = #tpu.dot_dimension_numbers<[1], [0], [0], [1], [0, 0, 1, 1], [], []>} : vector<16x512xbf16>, vector<512x128xbf16>, vector<16x128xf32> -> vector<16x128xf32>
    %c0_27 = arith.constant 0 : index
    %c0_28 = arith.constant 0 : index
    %47 = vector.load %arg10[%c0_27, %c0_28] : memref<1x128xf32, #tpu.memory_space<vmem>>, vector<1x128xf32>
    %48 = vector.broadcast %47 : vector<1x128xf32> to vector<16x128xf32>
    %49 = arith.addf %46, %48 : vector<16x128xf32>
    %50 = math.tanh %49 : vector<16x128xf32>
    %cst_29 = arith.constant 1.250000e+00 : f32
    %51 = vector.broadcast %cst_29 : f32 to vector<16x128xf32>
    %52 = arith.mulf %51, %50 : vector<16x128xf32>
    %cst_30 = arith.constant 7.500000e-01 : f32
    %53 = vector.broadcast %cst_30 : f32 to vector<16x128xf32>
    %54 = arith.addf %52, %53 : vector<16x128xf32>
    %c0_31 = arith.constant 0 : index
    %c0_32 = arith.constant 0 : index
    %55 = vector.load %arg11[%c0_31, %c0_32] : memref<16x128xf32, #tpu.memory_space<vmem>>, vector<16x128xf32>
    tpu.vector_store %arg11[%c0_31, %c0_32], %54 {strides = array<i32>} : memref<16x128xf32, #tpu.memory_space<vmem>>, vector<16x128xf32>,
    return
  }
  func.func @transform_0(%arg0: i32) -> (i32, i32) {
    %c0_i32 = arith.constant 0 : i32
    %c0_i32_0 = arith.constant 0 : i32
    return %arg0, %c0_i32 : i32, i32
  }
  func.func @transform_1(%arg0: i32) -> (i32, i32) {
    %c0_i32 = arith.constant 0 : i32
    %c0_i32_0 = arith.constant 0 : i32
    %c0_i32_1 = arith.constant 0 : i32
    return %c0_i32, %c0_i32_0 : i32, i32
  }
  func.func @transform_2(%arg0: i32) -> (i32, i32) {
    %c0_i32 = arith.constant 0 : i32
    %c0_i32_0 = arith.constant 0 : i32
    %c0_i32_1 = arith.constant 0 : i32
    return %c0_i32, %c0_i32_0 : i32, i32
  }
  func.func @transform_3(%arg0: i32) -> (i32, i32) {
    %c0_i32 = arith.constant 0 : i32
    %c0_i32_0 = arith.constant 0 : i32
    %c0_i32_1 = arith.constant 0 : i32
    return %c0_i32, %c0_i32_0 : i32, i32
  }
  func.func @transform_4(%arg0: i32) -> (i32, i32) {
    %c0_i32 = arith.constant 0 : i32
    %c0_i32_0 = arith.constant 0 : i32
    %c0_i32_1 = arith.constant 0 : i32
    return %c0_i32, %c0_i32_0 : i32, i32
  }
  func.func @transform_5(%arg0: i32) -> (i32, i32) {
    %c0_i32 = arith.constant 0 : i32
    %c0_i32_0 = arith.constant 0 : i32
    %c0_i32_1 = arith.constant 0 : i32
    return %c0_i32, %c0_i32_0 : i32, i32
  }
  func.func @transform_6(%arg0: i32) -> (i32, i32) {
    %c0_i32 = arith.constant 0 : i32
    %c0_i32_0 = arith.constant 0 : i32
    %c0_i32_1 = arith.constant 0 : i32
    return %c0_i32, %c0_i32_0 : i32, i32
  }
  func.func @transform_7(%arg0: i32) -> (i32, i32) {
    %c0_i32 = arith.constant 0 : i32
    %c0_i32_0 = arith.constant 0 : i32
    %c0_i32_1 = arith.constant 0 : i32
    return %c0_i32, %c0_i32_0 : i32, i32
  }
  func.func @transform_8(%arg0: i32) -> (i32, i32) {
    %c0_i32 = arith.constant 0 : i32
    %c0_i32_0 = arith.constant 0 : i32
    %c0_i32_1 = arith.constant 0 : i32
    return %c0_i32, %c0_i32_0 : i32, i32
  }
  func.func @transform_9(%arg0: i32) -> (i32, i32) {
    %c0_i32 = arith.constant 0 : i32
    %c0_i32_0 = arith.constant 0 : i32
    %c0_i32_1 = arith.constant 0 : i32
    return %c0_i32, %c0_i32_0 : i32, i32
  }
  func.func @transform_10(%arg0: i32) -> (i32, i32) {
    %c0_i32 = arith.constant 0 : i32
    %c0_i32_0 = arith.constant 0 : i32
    return %arg0, %c0_i32 : i32, i32
  }
}

</mosaic_0001>

<bundles_post_ra>
// kernel: tpu_custom_call.1
= control target key start
LH: loop header
LB: loop body
LE: loop exit
PB: predicated region body
PF: predicated region fallthrough
CT: control target
= control target key end

     0   :  { %s3164_s0 = inlined_call_operand.hbm [shape: f32[32,64], index: 0, kind: input, shape index: {}]   ;;  %s3165_s1 = inlined_call_operand.hbm [shape: bf16[64,64], index: 1, kind: input, shape index: {}]   ;;  %s3166_s2 = inlined_call_operand.hbm [shape: bf16[32,256], index: 2, kind: input, shape index: {}]   ;;  %s3167_s3 = inlined_call_operand.vmem [shape: f32[1,256], index: 3, kind: input, shape index: {}]   ;;  %s3168_s4 = inlined_call_operand.hbm [shape: bf16[256,256], index: 4, kind: input, shape index: {}]   ;;  %s3169_s5 = inlined_call_operand.vmem [shape: f32[1,256], index: 5, kind: input, shape index: {}]   ;;  %s3170_s6 = inlined_call_operand.hbm [shape: bf16[256,512], index: 6, kind: input, shape index: {}]   ;;  %s3171_s7 = inlined_call_operand.vmem [shape: f32[1,512], index: 7, kind: input, shape index: {}]   ;;  %s3172_s8 = inlined_call_operand.hbm [shape: bf16[512,128], index: 8, kind: input, shape index: {}]   ;;  %s3173_s9 = inlined_call_operand.vmem [shape: f32[1,128], index: 9, kind: input, shape index: {}]   ;;  %s3174_s10 = inlined_call_operand.hbm [shape: f32[32,128], index: 10, kind: output, shape index: {}]  }
   0x1   :  { %3183 = sst [smem:[#allocation19_spill]] %s3173_s9 }
   0x2   :  { %3184 = sst [smem:[#allocation20_spill]] %s3174_s10 }
   0x3   :  { %15 = vsyncpa [#allocation3], 0 }
   0x4   :  { %17 = vsyncpa [#allocation3 + $0x1], 0 }
   0x5   :  { %18 = vsyncpa [#allocation6], 0 }
   0x6   :  { %19 = vsyncpa [#allocation9], 0 }
   0x7   :  { %20 = vsyncpa [#allocation12], 0 }
   0x8   :  { %21 = vsyncpa [#allocation4], 0 }
   0x9   :  { %23 = vsyncpa [#allocation4 + $0x1], 0  ;;  %s2820_s13 = smov 0   ;;  %s2822_s14 = smov 0  }
   0xa   :  { %s2824_s15 = smov 0   ;;  %s2826_s16 = smov 0  }
   0xb LB: > { %s2746_s17 = smov [#allocation5]   ;;  %s2841_s19 = sadd.s32 4294967295, %s2744_s16   ;;  %s2744_s16 = sphi %s2826_s16, %s3212_s16   ;;  %s2740_s15 = sphi %s2824_s15, %s3211_s15   ;;  %s2736_s14 = sphi %s2822_s14, %s3210_s14   ;;  %s2732_s13 = sphi %s2820_s13, %s3209_s13  }
   0xc   : > { %s287_s18 = sshll.u32 %s2746_s17, 4  ;;  %p1944_p0 = scmp.ge.s32.totalorder %s2744_s16, 1  ;;  %s2846_s18 = int_to_ptr.vmem [resolvable:$true] %s287_s18 }
   0xd   : > { %p3177_p1 = scmp.eq.s32.totalorder %s2841_s19, 0  ;;  %p275_p2 = scmp.lt.s32.totalorder %s2744_s16, 3 }
   0xe   : > { %s2747_s22 = smov [#allocation8]   ;;  %s2748_s24 = smov [#allocation7]  }
   0xf   : > { %p2848_p3 = pnand %p1944_p0, %p275_p2  ;;  %s316_s23 = sshll.u32 %s2747_s22, 4  ;;  %s2861_s23 = int_to_ptr.vmem [resolvable:$true] %s316_s23 }
  0x10   : > { %s2863_s25 = sshll.u32 %s2748_s24, 4  ;;  %s2496_s28 = scalar_lea.hbm %s3165_s1, 512  ;;  %s301_s25 = int_to_ptr.vmem [resolvable:$true] %s2863_s25 }
  0x11   : > { %s3185_s20 = scalar_select %p2848_p3, 1, 0 }
  0x12   : > { %p2193_p5 = pneg %p2848_p3  ;;  %p2497_p7 = scmp.ne.s32.totalorder %s3165_s1, %s2496_s28 }
  0x13   : > { %p2503_p11 = scmp.lt.u32.totalorder %s2496_s28, %s3165_s1 }
  0x14   : > { %p2857_p6 = pnand %p2193_p5, %p3177_p1 }
  0x16   : > { %p2873_p8 = pneg %p2857_p6 }
  0x18   : > { %p2499_p9 = pnand %p2873_p8, %p2497_p7 }
  0x1a   : > { %p2500_p10 = pneg %p2499_p9 }
  0x1c   : > { %p2505_p12 = pnand %p2503_p11, %p2500_p10 }
  0x1e   : > { %2508 = shalt.err (!%p2505_p12)
}
  0x1f   : > { %s2509_s22 = scalar_lea.vmem %s2846_s18, 512  ;;  %p2517_p5 = scmp.lt.s32.totalorder %s2846_s18, %s2846_s18 }
  0x20   : > { %p2510_p13 = scmp.ne.s32.totalorder %s2846_s18, %s2509_s22  ;;  %p2518_p4 = scmp.lt.s32.totalorder %s2509_s22, %s2509_s22 }
  0x22   : > { %p2512_p0 = pnand %p2510_p13, %p2873_p8  ;;  %p2519_p7 = por %p2518_p4, %p2517_p5 }
  0x24   : > { %p2513_p2 = pneg %p2512_p0 }
  0x26   : > { %p2520_p9 = pnand %p2519_p7, %p2513_p2 }
  0x28   : > { %2523 = shalt.err (!%p2520_p9)
}
  0x29   : > { %s3176_s24 = smov 64   ;;  %s3179_s26 = smov 4  }
  0x2a   : > { %2196 = dma.hbm_to_vmem [thread:$0]  (!%p2857_p6), %s3165_s1, 512, %s2846_s18, [#allocation6], %s3176_s24, %s3176_s24, %s3179_s26  }
  0x2b   : > { %s2524_s12 = scalar_lea.hbm %s3168_s4, 4096 }
  0x2c   : > { %p2525_p4 = scmp.ne.s32.totalorder %s3168_s4, %s2524_s12  ;;  %p2531_p12 = scmp.lt.u32.totalorder %s2524_s12, %s3168_s4 }
  0x2e   : > { %p2527_p10 = pnand %p2525_p4, %p2873_p8 }
  0x30   : > { %p2528_p11 = pneg %p2527_p10 }
  0x32   : > { %p2533_p13 = pnand %p2531_p12, %p2528_p11 }
  0x34   : > { %2536 = shalt.err (!%p2533_p13)
}
  0x35   : > { %s2537_s18 = scalar_lea.vmem %s2861_s23, 4096  ;;  %p2545_p7 = scmp.lt.s32.totalorder %s2861_s23, %s2861_s23 }
  0x36   : > { %p2538_p0 = scmp.ne.s32.totalorder %s2861_s23, %s2537_s18  ;;  %p2546_p9 = scmp.lt.s32.totalorder %s2537_s18, %s2537_s18 }
  0x38   : > { %p2540_p2 = pnand %p2538_p0, %p2873_p8  ;;  %p2547_p4 = por %p2546_p9, %p2545_p7 }
  0x3a   : > { %p2541_p5 = pneg %p2540_p2 }
  0x3c   : > { %p2548_p10 = pnand %p2547_p4, %p2541_p5 }
  0x3e   : > { %2551 = shalt.err (!%p2548_p10)
}
  0x3f   : > { %s3180_s27 = smov 128   ;;  %s3181_s9 = smov 8  }
  0x40   : > { %2202 = dma.hbm_to_vmem [thread:$0]  (!%p2857_p6), %s3168_s4, 4096, %s2861_s23, [#allocation9], %s3180_s27, %s3180_s27, %s3181_s9  }
  0x41   : > { %s2552_s12 = scalar_lea.hbm %s3166_s2, 512 }
  0x42   : > { %p2553_p11 = scmp.ne.s32.totalorder %s3166_s2, %s2552_s12  ;;  %p2559_p0 = scmp.lt.u32.totalorder %s2552_s12, %s3166_s2 }
  0x44   : > { %p2555_p12 = pnand %p2553_p11, %p2873_p8 }
  0x46   : > { %p2556_p13 = pneg %p2555_p12 }
  0x48   : > { %p2561_p2 = pnand %p2559_p0, %p2556_p13 }
  0x4a   : > { %2564 = shalt.err (!%p2561_p2)
}
  0x4b   : > { %s2565_s10 = scalar_lea.vmem %s301_s25, 512  ;;  %p2573_p4 = scmp.lt.s32.totalorder %s301_s25, %s301_s25 }
  0x4c   : > { %p2566_p5 = scmp.ne.s32.totalorder %s301_s25, %s2565_s10  ;;  %p2574_p10 = scmp.lt.s32.totalorder %s2565_s10, %s2565_s10 }
  0x4e   : > { %p2568_p7 = pnand %p2566_p5, %p2873_p8  ;;  %p2575_p1 = por %p2574_p10, %p2573_p4 }
  0x50   : > { %p2569_p9 = pneg %p2568_p7 }
  0x52   : > { %p2576_p3 = pnand %p2575_p1, %p2569_p9 }
  0x54   : > { %2579 = shalt.err (!%p2576_p3)
}
  0x55   : > { %2199 = dma.hbm_to_vmem [thread:$0]  (!%p2857_p6), %s3166_s2, 512, %s301_s25, [#allocation6], %s3180_s27, %s3180_s27, %s3181_s9  }
  0x56   : > { %s2753_s28 = smov [#allocation10]   ;;  %s2580_s17 = scalar_lea.hbm %s3170_s6, 8192 }
  0x57   : > { %s332_s29 = sshll.u32 %s2753_s28, 4  ;;  %p2581_p1 = scmp.ne.s32.totalorder %s3170_s6, %s2580_s17  ;;  %s333_s29 = int_to_ptr.vmem [resolvable:$true] %s332_s29 }
  0x58   : > { %p2587_p12 = scmp.lt.u32.totalorder %s2580_s17, %s3170_s6 }
  0x59   : > { %p2583_p3 = pnand %p2581_p1, %p2873_p8 }
  0x5b   : > { %p2584_p11 = pneg %p2583_p3 }
  0x5d   : > { %p2589_p13 = pnand %p2587_p12, %p2584_p11 }
  0x5f   : > { %2592 = shalt.err (!%p2589_p13)
}
  0x60   : > { %s2593_s25 = scalar_lea.vmem %s333_s29, 8192  ;;  %p2601_p7 = scmp.lt.s32.totalorder %s333_s29, %s333_s29 }
  0x61   : > { %p2594_p0 = scmp.ne.s32.totalorder %s333_s29, %s2593_s25  ;;  %p2602_p9 = scmp.lt.s32.totalorder %s2593_s25, %s2593_s25 }
  0x63   : > { %p2596_p2 = pnand %p2594_p0, %p2873_p8  ;;  %p2603_p4 = por %p2602_p9, %p2601_p7 }
  0x65   : > { %p2597_p5 = pneg %p2596_p2 }
  0x67   : > { %p2604_p10 = pnand %p2603_p4, %p2597_p5 }
  0x69   : > { %2607 = shalt.err (!%p2604_p10)
}
  0x6a   : > { %s2754_s23 = smov 256   ;;  %s2755_s24 = smov 16  }
  0x6b   : > { %2205 = dma.hbm_to_vmem [thread:$0]  (!%p2857_p6), %s3170_s6, 8192, %s333_s29, [#allocation9], %s2754_s23, %s2754_s23, %s2755_s24  }
  0x6c   : > { %s2756_s30 = smov [#allocation11]   ;;  %s2608_s18 = scalar_lea.hbm %s3172_s8, 4096 }
  0x6d   : > { %s348_s12 = sshll.u32 %s2756_s30, 4  ;;  %p2609_p1 = scmp.ne.s32.totalorder %s3172_s8, %s2608_s18  ;;  %s349_s12 = int_to_ptr.vmem [resolvable:$true] %s348_s12 }
  0x6e   : > { %p2615_p12 = scmp.lt.u32.totalorder %s2608_s18, %s3172_s8 }
  0x6f   : > { %p2611_p3 = pnand %p2609_p1, %p2873_p8 }
  0x71   : > { %p2612_p11 = pneg %p2611_p3 }
  0x73   : > { %p2617_p13 = pnand %p2615_p12, %p2612_p11 }
  0x75   : > { %2620 = shalt.err (!%p2617_p13)
}
  0x76   : > { %s2621_s29 = scalar_lea.vmem %s349_s12, 4096  ;;  %p2629_p7 = scmp.lt.s32.totalorder %s349_s12, %s349_s12 }
  0x77   : > { %p2622_p0 = scmp.ne.s32.totalorder %s349_s12, %s2621_s29  ;;  %p2630_p9 = scmp.lt.s32.totalorder %s2621_s29, %s2621_s29 }
  0x79   : > { %p2624_p2 = pnand %p2622_p0, %p2873_p8  ;;  %p2631_p4 = por %p2630_p9, %p2629_p7 }
  0x7b   : > { %p2625_p5 = pneg %p2624_p2 }
  0x7d   : > { %p2632_p10 = pnand %p2631_p4, %p2625_p5 }
  0x7f   : > { %2635 = shalt.err (!%p2632_p10)
}
  0x80   : > { %s3188_s23 = smov 4   ;;  %s3189_s24 = smov 64  }
  0x81   : > { %2208 = dma.hbm_to_vmem [thread:$0]  (!%p2857_p6), %s3172_s8, 4096, %s349_s12, [#allocation12], %s3189_s24, %s3189_s24, %s3188_s23  }
  0x82   : > { %s1943_s21 = sadd.s32 4294967294, %s2744_s16   ;;  %s2986_s11 = sadd.s32 1, %s2744_s16  }
  0x83   : > { %s36_s26 = sadd.s32 1, %s2740_s15  ;;  %s33_s28 = ssub.s32 %s2744_s16, %s2986_s11 }
  0x84   : > { %p43_p8 = scmp.ne.s32.totalorder %s2740_s15, %s2736_s14  ;;  %p34_p1 = scmp.eq.s32.totalorder %s33_s28, 0 }
  0x85   : > { %p44_p3 = scmp.eq.s32.totalorder %s2744_s16, 0  ;;  %p49_p11 = scmp.ne.s32.totalorder %s2736_s14, %s2732_s13 }
  0x86   : > { %p262_p12 = scmp.eq.s32.totalorder %s2841_s19, 1  ;;  %p3190_p0 = scmp.eq.s32.totalorder %s2841_s19, 0 }
  0x87   : > { %s2998_s30 = scalar_select %p34_p1, %s2740_s15, %s36_s26  }
  0x88   : > { %p45_p13 = por %p44_p3, %p43_p8  ;;  %p3002_p2 = por %p3190_p0, %p49_p11 }
  0x89   : > { %p3006_p6 = por %p262_p12, %p43_p8  ;;  %p268_p5 = scmp.eq.s32.totalorder %s1943_s21, 1 }
  0x8a   : > { %p2222_p7 = scmp.lt.s32.totalorder %s2744_s16, 2  ;;  %s365_s22 = sand.u32 1, %s2740_s15  }
  0x8b   : > { %s3192_s12 = scalar_select %p3006_p6, 1, 0 }
  0x8c   : > { %p3012_p9 = por %p268_p5, %p49_p11  ;;  %s1951_s10 = sshll.u32 %s365_s22, 4 }
  0x8d   : > { %s2106_s25 = sshll.u32 %s2744_s16, 8  ;;  %s369_s27 = scalar_lea.vmem [#allocation2], %s1951_s10 }
  0x8e   : > { %s3193_s18 = scalar_select %p3012_p9, 1, 0 }
  0x8f   : > { %s3020_s24 = scalar_lea.hbm %s3164_s0, %s2106_s25  ;;  %s376_s9 = sshll.u32 %s369_s27, 4  ;;  %s3026_s9 = int_to_ptr.vmem [resolvable:$true] %s376_s9 }
  0x90   : > { %p3022_p4 = pnand %p2222_p7, %p45_p13  ;;  %s3028_s26 = scalar_lea.sflag [#allocation3], %s365_s22 }
  0x91   : > { %s2636_s28 = scalar_lea.hbm %s3020_s24, 256  ;;  %s2641_s29 = scalar_lea.hbm %s3164_s0, 512 }
  0x92   : > { %p2637_p10 = scmp.ne.s32.totalorder %s3020_s24, %s2636_s28  ;;  %p2638_p8 = pneg %p3022_p4 }
  0x93   : > { %p2642_p11 = scmp.lt.u32.totalorder %s3020_s24, %s3164_s0  ;;  %p2643_p12 = scmp.lt.u32.totalorder %s2641_s29, %s2636_s28 }
  0x94   : > { %p2639_p1 = pnand %p2638_p8, %p2637_p10  ;;  %p2645_p0 = scmp.lt.u32.totalorder %s2636_s28, %s3020_s24 }
  0x95   : > { %p2644_p13 = por %p2643_p12, %p2642_p11 }
  0x96   : > { %p2640_p3 = pneg %p2639_p1 }
  0x97   : > { %p2646_p5 = por %p2645_p0, %p2644_p13 }
  0x99   : > { %p2647_p7 = pnand %p2646_p5, %p2640_p3 }
  0x9b   : > { %2650 = shalt.err (!%p2647_p7)
}
  0x9c   : > { %s2651_s22 = scalar_lea.vmem %s3026_s9, 256  ;;  %s2757_s10 = smov [#allocation2]  }
  0x9d   : > { %p2652_p10 = scmp.ne.s32.totalorder %s3026_s9, %s2651_s22  ;;  %s2656_s25 = sshll.u32 %s2757_s10, 4  ;;  %s2657_s25 = int_to_ptr.vmem [resolvable:$false] %s2656_s25 }
  0x9e   : > { %s2658_s23 = scalar_lea.vmem %s2657_s25, 512  ;;  %p2659_p6 = scmp.lt.s32.totalorder %s3026_s9, %s2657_s25 }
  0x9f   : > { %p2654_p1 = pnand %p2652_p10, %p2638_p8  ;;  %p2660_p11 = scmp.lt.s32.totalorder %s2658_s23, %s2651_s22 }
  0xa1   : > { %p2655_p9 = pneg %p2654_p1  ;;  %p2661_p12 = por %p2660_p11, %p2659_p6 }
  0xa3   : > { %p2662_p13 = pnand %p2661_p12, %p2655_p9 }
  0xa5   : > { %2665 = shalt.err (!%p2662_p13)
}
  0xa6   : > { %s3195_s28 = smov 8   ;;  %s3196_s29 = smov 128  }
  0xa7   : > { %2212 = dma.hbm_to_vmem [thread:$0]  (!%p3022_p4), %s3020_s24, 256, %s3026_s9, %s3028_s26, %s3196_s29, %s3196_s29, %s3195_s28  }
  0xa8   : > { %p3197_p8 = scmp.ne.s32.totalorder %s3185_s20, 0 }
  0xa9   : > { %s3062_s27 = sand.u32 (!%p3197_p8), 1, %s2736_s14  }
  0xaa   : > { %388 = sbr.rel (%p3197_p8) target bundleno = 1536 (0x600), region = 60  ;;  %s1955_s22 = sshll.u32 (!%p3197_p8), %s3062_s27, 4 }
  0xab   : > { %s391_s10 = scalar_lea.sflag (!%p3197_p8), [#allocation3], %s3062_s27  ;;  %s394_s21 = scalar_lea.vmem (!%p3197_p8), [#allocation2], %s1955_s22 }
  0xb1   : > { %2711 = dma.done.wait (%p3002_p2), %s391_s10, 256  }
  0xb2   : > { %2713 = vsyncadd (%p3002_p2), %s391_s10, 4294967040  ;;  %p3198_p6 = scmp.eq.s32.totalorder %s2841_s19, 0 }
  0xb4   : > { %2715 = dma.done.wait (%p3198_p6), [#allocation6], 1024   ;;  %p3199_p9 = pmov %p3198_p6 }
  0xb5   : > { %p3200_p4 = pmov %p3198_p6 }
  0xb6   : > { %2717 = vsyncadd (%p3199_p9), [#allocation6], 4294966272 }
  0xb7   : > { %2719 = dma.done.wait (%p3200_p4), [#allocation9], 12288   ;;  %p3201_p3 = pmov %p3200_p4 }
  0xb9   : > { %2721 = vsyncadd (%p3201_p3), [#allocation9], 4294955008  ;;  %p3202_p0 = pmov %p3201_p3 }
  0xbb   : > { %2723 = dma.done.wait (%p3202_p0), [#allocation12], 4096   ;;  %p3203_p5 = pmov %p3202_p0 }
  0xbc   : > { %v2758_v0 = vmov 0.0   ;;  %vm2759_vm0 = vmmov 0   ;;  %v2278_v1 = vld [vmem:[#allocation5] sm:$0xff]   ;;  %v2279_v2 = vld [vmem:[#allocation5 + $0x8] sm:$0xff]   ;;  %v2280_v3 = vld [vmem:[#allocation5 + $0x10] sm:$0xff]   ;;  %vm489_vm1 = vcmask 523264  }
  0xbd   : > { %2725 = vsyncadd (%p3203_p5), [#allocation12], 4294963200  ;;  %2157 = vmatprep.subr.bf16.mxu0 %v2758_v0  ;;  %2165 = vmatprep.mubr.msk.bf16.mxu0 %vm2759_vm0, %v2758_v0  ;;  %v2281_v4 = vld [vmem:[#allocation5 + $0x18] sm:$0xff]   ;;  %v454_v5 = vld [vmem:[%s394_s21] sm:$0xff]  ;;  %s2760_s20 = smov 96   ;;  %v2761_v18 = vmov 0  }
  0xbe   : > { %2158 = vmatpush3.bf16.msra.mxu0 %v2278_v1  ;;  %v455_v6 = vld [vmem:[%s394_s21 + $0x8] sm:$0xff]  ;;  %637 = vmatprep.mubr.bf16.mxu1 %v2761_v18  ;;  %vm601_vm4 = vcmask 261120   ;;  %v2360_v18 = vld [vmem:[#allocation10 + $0x80] ss:$16 sps:$4 sm:$0xff]   ;;  %s3204_s10 = sld [smem:[#allocation19_spill]]  ;;  %s450_s21 = scalar_lea.vmem [#allocation13], %s1955_s22 }
  0xbf   : > { %2159 = vmatprep.subr.bf16.mxu0 %v2758_v0  ;;  %v456_v7 = vpack.c.bf16 %v455_v6, %v454_v5  ;;  %v2282_v13 = vld [vmem:[#allocation7 + $0x4] ss:$8 sps:$4 sm:$0xff]   ;;  %v2284_v15 = vld [vmem:[#allocation7] ss:$8 sps:$4 sm:$0xff]   ;;  %v2285_v16 = vld [vmem:[#allocation7 + $0x14] ss:$8 sps:$4 sm:$0xff]  }
  0xc0   : > { %605 = vmatprep.subr.bf16.mxu1 %v2282_v13  ;;  %v2287_v17 = vld [vmem:[#allocation7 + $0x10] ss:$8 sps:$4 sm:$0xff]   ;;  %v2290_v19 = vld [vmem:[#allocation8 + $0x4] ss:$8 sps:$4 sm:$0xff]   ;;  %v2288_v40 = vld [vmem:[#allocation8] ss:$8 sps:$4 sm:$0xff]  }
  0xc1   : > { %606 = vmatpush1.bf16.msra.mxu1 %v2284_v15  ;;  %v2293_v42 = vld [vmem:[#allocation8 + $0x14] ss:$8 sps:$4 sm:$0xff]   ;;  %v2291_v43 = vld [vmem:[#allocation8 + $0x10] ss:$8 sps:$4 sm:$0xff]   ;;  %v2296_v44 = vld [vmem:[#allocation8 + $0x24] ss:$8 sps:$4 sm:$0xff]  }
  0xc2   : > { %2160 = vmatpush3.bf16.msra.mxu0 %v2279_v2  ;;  %607 = vmatprep.subr.bf16.mxu1 %v2285_v16  ;;  %v2294_v45 = vld [vmem:[#allocation8 + $0x20] ss:$8 sps:$4 sm:$0xff]   ;;  %v2299_v46 = vld [vmem:[#allocation8 + $0x34] ss:$8 sps:$4 sm:$0xff]   ;;  %v2297_v47 = vld [vmem:[#allocation8 + $0x30] ss:$8 sps:$4 sm:$0xff]  }
  0xc3   : > { %2161 = vmatprep.subr.bf16.mxu0 %v2758_v0  ;;  %v2302_v48 = vld [vmem:[#allocation8 + $0x44] ss:$8 sps:$4 sm:$0xff]   ;;  %v2300_v49 = vld [vmem:[#allocation8 + $0x40] ss:$8 sps:$4 sm:$0xff]   ;;  %v2305_v50 = vld [vmem:[#allocation8 + $0x54] ss:$8 sps:$4 sm:$0xff]  }
  0xc4   : > { %v2303_v51 = vld [vmem:[#allocation8 + $0x50] ss:$8 sps:$4 sm:$0xff]   ;;  %v2308_v52 = vld [vmem:[#allocation8 + $0x64] ss:$8 sps:$4 sm:$0xff]   ;;  %v2306_v53 = vld [vmem:[#allocation8 + $0x60] ss:$8 sps:$4 sm:$0xff]  }
  0xc5   : > { %608 = vmatpush1.bf16.msra.mxu1 %v2287_v17  ;;  %v2311_v54 = vld [vmem:[#allocation8 + $0x74] ss:$8 sps:$4 sm:$0xff]   ;;  %v2309_v55 = vld [vmem:[#allocation8 + $0x70] ss:$8 sps:$4 sm:$0xff]   ;;  %v2314_v56 = vld [vmem:[#allocation8 + $0x84] ss:$8 sps:$4 sm:$0xff]  }
  0xc6   : > { %2162 = vmatpush3.bf16.msra.mxu0 %v2280_v3  ;;  %874 = vmatprep.subr.bf16.mxu1 %v2290_v19  ;;  %v2312_v57 = vld [vmem:[#allocation8 + $0x80] ss:$8 sps:$4 sm:$0xff]   ;;  %v2317_v58 = vld [vmem:[#allocation8 + $0x94] ss:$8 sps:$4 sm:$0xff]   ;;  %v2315_v59 = vld [vmem:[#allocation8 + $0x90] ss:$8 sps:$4 sm:$0xff]  }
  0xc7   : > { %2163 = vmatprep.subr.bf16.mxu0 %v2758_v0  ;;  %v2320_v60 = vld [vmem:[#allocation8 + $0xa4] ss:$8 sps:$4 sm:$0xff]   ;;  %v2318_v61 = vld [vmem:[#allocation8 + $0xa0] ss:$8 sps:$4 sm:$0xff]   ;;  %v2323_v62 = vld [vmem:[#allocation8 + $0xb4] ss:$8 sps:$4 sm:$0xff]  }
  0xc8   : > { %v2321_v63 = vld [vmem:[#allocation8 + $0xb0] ss:$8 sps:$4 sm:$0xff]   ;;  %v2326_v0 = vld [vmem:[#allocation8 + $0xc4] ss:$8 sps:$4 sm:$0xff]   ;;  %v2324_v1 = vld [vmem:[#allocation8 + $0xc0] ss:$8 sps:$4 sm:$0xff]  }
  0xc9   : > { %v2329_v2 = vld [vmem:[#allocation8 + $0xd4] ss:$8 sps:$4 sm:$0xff]   ;;  %v2327_v3 = vld [vmem:[#allocation8 + $0xd0] ss:$8 sps:$4 sm:$0xff]   ;;  %v2330_v5 = vld [vmem:[#allocation8 + $0xe0] ss:$8 sps:$4 sm:$0xff]  }
  0xca   : > { %2164 = vmatpush3.bf16.msra.mxu0 %v2281_v4  ;;  %v2332_v4 = vld [vmem:[#allocation8 + $0xe4] ss:$8 sps:$4 sm:$0xff]   ;;  %v2335_v6 = vld [vmem:[#allocation8 + $0xf4] ss:$8 sps:$4 sm:$0xff]   ;;  %v2354_v16 = vld [vmem:[#allocation10 + $0x60] ss:$16 sps:$4 sm:$0xff]  }
  0xcb   : > { %v2350_v13 = vld [vmem:[#allocation10 + $0x44] ss:$16 sps:$4 sm:$0xff]   ;;  %s2107_s17 = sshll.u32 %s2841_s19, 8  ;;  %s3205_s26 = sld [smem:[#allocation20_spill]] }
  0xcc   : > { %v2356_v15 = vld [vmem:[#allocation10 + $0x64] ss:$16 sps:$4 sm:$0xff]   ;;  %s1809_s23 = scalar_lea.sflag [#allocation4], %s3062_s27  ;;  %p3206_p7 = scmp.ne.s32.totalorder %s3192_s12, 0 }
  0xcd   : > { %2166 = vmatmul.mubr.msk.bf16.vlgmr.msra.gmra.mrb[0].mxu0 %vm489_vm1, %v456_v7  ;;  %v2333_v7 = vld [vmem:[#allocation8 + $0xf0] ss:$8 sps:$4 sm:$0xff]   ;;  %v2362_v17 = vld [vmem:[#allocation10 + $0x84] ss:$16 sps:$4 sm:$0xff]   ;;  %s2762_s19 = smov [#allocation13]  }
  0xce   : > { %v2368_v19 = vld [vmem:[#allocation10 + $0xa4] ss:$16 sps:$4 sm:$0xff]   ;;  %s2670_s28 = sshll.u32 %s2762_s19, 4  ;;  %s2671_s28 = int_to_ptr.vmem [resolvable:$false] %s2670_s28 }
  0xcf   : > { %s2672_s29 = scalar_lea.vmem %s2671_s28, 512 }
  0xd1   : > { %s3118_s25 = scalar_lea.hbm %s3205_s26, %s2107_s17 }
 0x1a0   : > { %v527_v8 = vpop.f32.mrb[0].mxu0 }
 0x1a1   : > { %v534_v9 = vmul.f32 %v527_v8, %v527_v8  ;;  %v2167_v10 = vpop.f32.mrb[1].mxu0  ;;  %v2336_v8 = vld [vmem:[#allocation10] ss:$16 sps:$4 sm:$0xff]  }
 0x1a2   : > { %v530_v11 = vpop.f32.mrb[2].mxu0  ;;  %v2341_v10 = vld [vmem:[#allocation10 + $0xc] ss:$16 sps:$4 sm:$0xff]  }
 0x1a3   : > { %538 = vrot.lane.b32.xlu0 %v534_v9, %s2760_s20  ;;  %v2168_v12 = vpop.f32.mrb[3].mxu0  ;;  %v535_v14 = vmul.f32 %v530_v11, %v530_v11  ;;  %v2344_v11 = vld [vmem:[#allocation10 + $0x24] ss:$16 sps:$4 sm:$0xff]  }
 0x1a4   : > { %v2342_v12 = vld [vmem:[#allocation10 + $0x20] ss:$16 sps:$4 sm:$0xff]  }
 0x1a7   : > { %540 = vrot.lane.b32.xlu0 %v535_v14, %s2760_s20  ;;  %s1822_s20 = sshll.u32 %s450_s21, 4  ;;  %s3120_s20 = int_to_ptr.vmem [resolvable:$true] %s1822_s20 }
 0x1a8   : > { %s2666_s22 = scalar_lea.vmem %s3120_s20, 256  ;;  %p2673_p11 = scmp.lt.s32.totalorder %s3120_s20, %s2671_s28 }
 0x1a9   : > { %p2667_p2 = scmp.ne.s32.totalorder %s3120_s20, %s2666_s22  ;;  %p2674_p12 = scmp.lt.s32.totalorder %s2672_s29, %s2666_s22 }
 0x1ab   : > { %p2668_p10 = pnand %p2667_p2, %p3206_p7  ;;  %p2675_p13 = por %p2674_p12, %p2673_p11 }
 0x1ad   : > { %p2669_p1 = pneg %p2668_p10 }
 0x1af   : > { %p2676_p8 = pnand %p2675_p13, %p2669_p1 }
 0x215   : > { %v539_v20 = vpop.permute.xlu0 %538 }
 0x216   : > { %v544_v21 = vadd.f32 %v539_v20, %v534_v9  ;;  %v2338_v9 = vld [vmem:[#allocation10 + $0x4] ss:$16 sps:$4 sm:$0xff]   ;;  %v2366_v20 = vld [vmem:[#allocation10 + $0xa0] ss:$16 sps:$4 sm:$0xff]  }
 0x217   : > { %1325 = vmatprep.subr.bf16.mxu0 %v2338_v9 }
 0x218   : > { %v546_v22 = vadd.f32 1.0, %v544_v21  ;;  %v549_v26 = vmul.f32 -0.5, %v544_v21  ;;  %v552_v31 = vand.u32 2147483647, %v544_v21  ;;  %1326 = vmatpush1.bf16.msra.mxu0 %v2336_v8 }
 0x219   : > { %v541_v23 = vpop.permute.xlu0 %540  ;;  %1327 = vmatprep.subr.bf16.mxu0 %v2344_v11  ;;  %v2347_v11 = vld [vmem:[#allocation10 + $0x2c] ss:$16 sps:$4 sm:$0xff]  }
 0x21a   : > { %2464 = vlog2.f32 %v546_v22  ;;  %v545_v24 = vadd.f32 %v541_v23, %v535_v14  ;;  %v550_v29 = vadd.f32 1.0, %v549_v26  ;;  %vm553_vm2 = vcmp.lt.f32.partialorder %v552_v31, 0.0004427343  ;;  %v2348_v14 = vld [vmem:[#allocation10 + $0x40] ss:$16 sps:$4 sm:$0xff]  }
 0x21b   : > { %v2372_v22 = vld [vmem:[#allocation10 + $0xc0] ss:$16 sps:$4 sm:$0xff]   ;;  %v2380_v23 = vld [vmem:[#allocation10 + $0xe4] ss:$16 sps:$4 sm:$0xff]  }
 0x21c   : > { %v555_v25 = vadd.f32 1.0, %v545_v24  ;;  %v558_v27 = vmul.f32 -0.5, %v545_v24  ;;  %v561_v32 = vand.u32 2147483647, %v545_v24  ;;  %v551_v35 = vmul.f32 %v550_v29, %v544_v21  ;;  %1328 = vmatpush1.bf16.msra.mxu0 %v2342_v12  ;;  %v2374_v21 = vld [vmem:[#allocation10 + $0xc4] ss:$16 sps:$4 sm:$0xff]  }
 0x21d   : > { %1329 = vmatprep.subr.bf16.mxu0 %v2350_v13  ;;  %v2384_v26 = vld [vmem:[#allocation10 + $0x100] ss:$16 sps:$4 sm:$0xff]   ;;  %v2398_v29 = vld [vmem:[#allocation10 + $0x144] ss:$16 sps:$4 sm:$0xff]   ;;  %v2345_v12 = vld [vmem:[#allocation10 + $0x28] ss:$16 sps:$4 sm:$0xff]  }
 0x21e   : > { %2466 = vlog2.f32 %v555_v25  ;;  %v559_v30 = vadd.f32 1.0, %v558_v27  ;;  %vm562_vm3 = vcmp.lt.f32.partialorder %v561_v32, 0.0004427343  ;;  %v2386_v25 = vld [vmem:[#allocation10 + $0x104] ss:$16 sps:$4 sm:$0xff]  }
 0x21f   : > { %v2392_v27 = vld [vmem:[#allocation10 + $0x124] ss:$16 sps:$4 sm:$0xff]   ;;  %v2402_v32 = vld [vmem:[#allocation10 + $0x160] ss:$16 sps:$4 sm:$0xff]   ;;  %v2353_v13 = vld [vmem:[#allocation10 + $0x4c] ss:$16 sps:$4 sm:$0xff]  }
 0x220   : > { %v560_v37 = vmul.f32 %v559_v30, %v545_v24  ;;  %1330 = vmatpush1.bf16.msra.mxu0 %v2348_v14  ;;  %v2378_v24 = vld [vmem:[#allocation10 + $0xe0] ss:$16 sps:$4 sm:$0xff]   ;;  %v2404_v31 = vld [vmem:[#allocation10 + $0x164] ss:$16 sps:$4 sm:$0xff]   ;;  %v2351_v14 = vld [vmem:[#allocation10 + $0x48] ss:$16 sps:$4 sm:$0xff]  }
 0x221   : > { %1331 = vmatprep.subr.bf16.mxu0 %v2356_v15  ;;  %v2396_v30 = vld [vmem:[#allocation10 + $0x140] ss:$16 sps:$4 sm:$0xff]   ;;  %v2359_v15 = vld [vmem:[#allocation10 + $0x6c] ss:$16 sps:$4 sm:$0xff]  }
 0x224   : > { %v2465_v28 = vpop.eup %2464  ;;  %1332 = vmatpush1.bf16.msra.mxu0 %v2354_v16  ;;  %v2357_v16 = vld [vmem:[#allocation10 + $0x68] ss:$16 sps:$4 sm:$0xff]  }
 0x225   : > { %v548_v33 = vmul.f32 0.6931472, %v2465_v28  ;;  %1333 = vmatprep.subr.bf16.mxu0 %v2362_v17  ;;  %v2390_v28 = vld [vmem:[#allocation10 + $0x120] ss:$16 sps:$4 sm:$0xff]   ;;  %v2365_v17 = vld [vmem:[#allocation10 + $0x8c] ss:$16 sps:$4 sm:$0xff]  }
 0x227   : > { %v554_v38 = vsel %vm553_vm2, %v551_v35, %v548_v33  ;;  %v2410_v33 = vld [vmem:[#allocation10 + $0x184] ss:$16 sps:$4 sm:$0xff]  }
 0x228   : > { %v2467_v34 = vpop.eup %2466  ;;  %1334 = vmatpush1.bf16.msra.mxu0 %v2360_v18  ;;  %v2416_v35 = vld [vmem:[#allocation10 + $0x1a4] ss:$16 sps:$4 sm:$0xff]   ;;  %v2363_v18 = vld [vmem:[#allocation10 + $0x88] ss:$16 sps:$4 sm:$0xff]  }
 0x229   : > { %v557_v36 = vmul.f32 0.6931472, %v2467_v34  ;;  %1335 = vmatprep.subr.bf16.mxu0 %v2368_v19  ;;  %v2408_v34 = vld [vmem:[#allocation10 + $0x180] ss:$16 sps:$4 sm:$0xff]   ;;  %v2371_v19 = vld [vmem:[#allocation10 + $0xac] ss:$16 sps:$4 sm:$0xff]  }
 0x22b   : > { %v563_v39 = vsel %vm562_vm3, %v560_v37, %v557_v36  ;;  %v2414_v36 = vld [vmem:[#allocation10 + $0x1a0] ss:$16 sps:$4 sm:$0xff]   ;;  %v571_v37 = vlaneseq }
 0x22c   : > { %v564_v41 = vpack.c.bf16 %v563_v39, %v554_v38  ;;  %1336 = vmatpush1.bf16.msra.mxu0 %v2366_v20  ;;  %v2369_v20 = vld [vmem:[#allocation10 + $0xa8] ss:$16 sps:$4 sm:$0xff]  }
 0x22d   : > { %1337 = vmatprep.subr.bf16.mxu0 %v2374_v21  ;;  %v3084_v38 = vshrl.u32 %v571_v37, 7  ;;  %v2377_v21 = vld [vmem:[#allocation10 + $0xcc] ss:$16 sps:$4 sm:$0xff]   ;;  %v2422_v37 = vld [vmem:[#allocation10 + $0x1c4] ss:$16 sps:$4 sm:$0xff]  }
 0x22e   : > { %1971 = vmatmul.mubr.msk.bf16.vlgmr.msra.gmra.mrb[0].mxu1 %vm601_vm4, %v564_v41 }
 0x22f   : > { %875 = vmatpush1.bf16.msra.mxu1 %v2288_v40  ;;  %v3087_v39 = vsub.s32 0, %v3084_v38  ;;  %v569_v40 = vld [vmem:[%s3167_s3] sm:$0x3]  ;;  %v3093_v41 = vsub.s32 1, %v3084_v38 }
 0x230   : > { %876 = vmatprep.subr.bf16.mxu1 %v2293_v42  ;;  %1338 = vmatpush1.bf16.msra.mxu0 %v2372_v22  ;;  %v2375_v22 = vld [vmem:[#allocation10 + $0xc8] ss:$16 sps:$4 sm:$0xff]  }
 0x231   : > { %1339 = vmatprep.subr.bf16.mxu0 %v2380_v23  ;;  %v574_v42 = vrot.slane %v569_v40, %v3087_v39  ;;  %v2383_v23 = vld [vmem:[#allocation10 + $0xec] ss:$16 sps:$4 sm:$0xff]  }
 0x233   : > { %877 = vmatpush1.bf16.msra.mxu1 %v2291_v43  ;;  %v578_v43 = vrot.slane %v569_v40, %v3093_v41  ;;  %v2425_v40 = vld [vmem:[#allocation10 + $0x1cc] ss:$16 sps:$4 sm:$0xff]  }
 0x234   : > { %878 = vmatprep.subr.bf16.mxu1 %v2296_v44  ;;  %1340 = vmatpush1.bf16.msra.mxu0 %v2378_v24  ;;  %v2381_v24 = vld [vmem:[#allocation10 + $0xe8] ss:$16 sps:$4 sm:$0xff]  }
 0x235   : > { %1341 = vmatprep.subr.bf16.mxu0 %v2386_v25  ;;  %v2389_v25 = vld [vmem:[#allocation10 + $0x10c] ss:$16 sps:$4 sm:$0xff]  }
 0x237   : > { %879 = vmatpush1.bf16.msra.mxu1 %v2294_v45 }
 0x238   : > { %880 = vmatprep.subr.bf16.mxu1 %v2299_v46  ;;  %1342 = vmatpush1.bf16.msra.mxu0 %v2384_v26  ;;  %v2387_v26 = vld [vmem:[#allocation10 + $0x108] ss:$16 sps:$4 sm:$0xff]  }
 0x239   : > { %1343 = vmatprep.subr.bf16.mxu0 %v2392_v27  ;;  %v2395_v27 = vld [vmem:[#allocation10 + $0x12c] ss:$16 sps:$4 sm:$0xff]  }
 0x23b   : > { %881 = vmatpush1.bf16.msra.mxu1 %v2297_v47 }
 0x23c   : > { %882 = vmatprep.subr.bf16.mxu1 %v2302_v48  ;;  %1344 = vmatpush1.bf16.msra.mxu0 %v2390_v28  ;;  %v2393_v28 = vld [vmem:[#allocation10 + $0x128] ss:$16 sps:$4 sm:$0xff]  }
 0x23d   : > { %1345 = vmatprep.subr.bf16.mxu0 %v2398_v29  ;;  %v2401_v29 = vld [vmem:[#allocation10 + $0x14c] ss:$16 sps:$4 sm:$0xff]  }
 0x23f   : > { %883 = vmatpush1.bf16.msra.mxu1 %v2300_v49 }
 0x240   : > { %884 = vmatprep.subr.bf16.mxu1 %v2305_v50  ;;  %1346 = vmatpush1.bf16.msra.mxu0 %v2396_v30  ;;  %v2399_v30 = vld [vmem:[#allocation10 + $0x148] ss:$16 sps:$4 sm:$0xff]  }
 0x241   : > { %1347 = vmatprep.subr.bf16.mxu0 %v2404_v31  ;;  %v2407_v31 = vld [vmem:[#allocation10 + $0x16c] ss:$16 sps:$4 sm:$0xff]  }
 0x243   : > { %885 = vmatpush1.bf16.msra.mxu1 %v2303_v51 }
 0x244   : > { %886 = vmatprep.subr.bf16.mxu1 %v2308_v52  ;;  %1348 = vmatpush1.bf16.msra.mxu0 %v2402_v32  ;;  %v2405_v32 = vld [vmem:[#allocation10 + $0x168] ss:$16 sps:$4 sm:$0xff]  }
 0x245   : > { %1349 = vmatprep.subr.bf16.mxu0 %v2410_v33  ;;  %v2413_v33 = vld [vmem:[#allocation10 + $0x18c] ss:$16 sps:$4 sm:$0xff]  }
 0x247   : > { %887 = vmatpush1.bf16.msra.mxu1 %v2306_v53 }
 0x248   : > { %888 = vmatprep.subr.bf16.mxu1 %v2311_v54  ;;  %1350 = vmatpush1.bf16.msra.mxu0 %v2408_v34  ;;  %v2411_v34 = vld [vmem:[#allocation10 + $0x188] ss:$16 sps:$4 sm:$0xff]  }
 0x249   : > { %1351 = vmatprep.subr.bf16.mxu0 %v2416_v35  ;;  %v2419_v35 = vld [vmem:[#allocation10 + $0x1ac] ss:$16 sps:$4 sm:$0xff]  }
 0x24b   : > { %889 = vmatpush1.bf16.msra.mxu1 %v2309_v55 }
 0x24c   : > { %890 = vmatprep.subr.bf16.mxu1 %v2314_v56  ;;  %1352 = vmatpush1.bf16.msra.mxu0 %v2414_v36  ;;  %v2417_v36 = vld [vmem:[#allocation10 + $0x1a8] ss:$16 sps:$4 sm:$0xff]  }
 0x24d   : > { %1353 = vmatprep.subr.bf16.mxu0 %v2422_v37 }
 0x24f   : > { %891 = vmatpush1.bf16.msra.mxu1 %v2312_v57 }
 0x250   : > { %892 = vmatprep.subr.bf16.mxu1 %v2317_v58 }
 0x253   : > { %893 = vmatpush1.bf16.msra.mxu1 %v2315_v59 }
 0x254   : > { %894 = vmatprep.subr.bf16.mxu1 %v2320_v60 }
 0x257   : > { %895 = vmatpush1.bf16.msra.mxu1 %v2318_v61 }
 0x258   : > { %896 = vmatprep.subr.bf16.mxu1 %v2323_v62 }
 0x25b   : > { %897 = vmatpush1.bf16.msra.mxu1 %v2321_v63 }
 0x25c   : > { %898 = vmatprep.subr.bf16.mxu1 %v2326_v0 }
 0x25f   : > { %899 = vmatpush1.bf16.msra.mxu1 %v2324_v1 }
 0x260   : > { %900 = vmatprep.subr.bf16.mxu1 %v2329_v2 }
 0x263   : > { %901 = vmatpush1.bf16.msra.mxu1 %v2327_v3 }
 0x264   : > { %902 = vmatprep.subr.bf16.mxu1 %v2332_v4 }
 0x267   : > { %903 = vmatpush1.bf16.msra.mxu1 %v2330_v5 }
 0x268   : > { %904 = vmatprep.subr.bf16.mxu1 %v2335_v6 }
 0x26b   : > { %905 = vmatpush1.bf16.msra.mxu1 %v2333_v7 }
 0x26c   : > { %1368 = vmatprep.subr.bf16.mxu1 %v2341_v10  ;;  %v2339_v10 = vld [vmem:[#allocation10 + $0x8] ss:$16 sps:$4 sm:$0xff]  }
 0x301   : > { %v639_v44 = vpop.f32.mrb[0].mxu1 }
 0x302   : > { %v640_v45 = vadd.f32 %v639_v44, %v574_v42  ;;  %v641_v46 = vpop.f32.mrb[1].mxu1  ;;  %v2428_v44 = vld [vmem:[#allocation10 + $0x1e4] ss:$16 sps:$4 sm:$0xff]  }
 0x303   : > { %v642_v47 = vadd.f32 %v641_v46, %v578_v43  ;;  %v643_v48 = vpop.f32.mrb[2].mxu1  ;;  %v2426_v46 = vld [vmem:[#allocation10 + $0x1e0] ss:$16 sps:$4 sm:$0xff]  }
 0x304   : > { %v652_v49 = vmul.f32 0.70710677, %v640_v45  ;;  %v644_v50 = vadd.f32 %v643_v48, %v574_v42  ;;  %v645_v51 = vpop.f32.mrb[3].mxu1  ;;  %v648_v62 = vmul.f32 0.5, %v640_v45  ;;  %v2420_v42 = vld [vmem:[#allocation10 + $0x1c0] ss:$16 sps:$4 sm:$0xff]  }
 0x305   : > { %v653_v52 = vmul.f32 0.70710677, %v642_v47  ;;  %v646_v53 = vadd.f32 %v645_v51, %v578_v43  ;;  %v649_v1 = vmul.f32 0.5, %v642_v47  ;;  %v2423_v43 = vld [vmem:[#allocation10 + $0x1c8] ss:$16 sps:$4 sm:$0xff]   ;;  %1354 = vmatpush1.bf16.msra.mxu0 %v2420_v42  ;;  %v2432_v48 = vld [vmem:[#allocation11 + $0x40] sm:$0xff]  }
 0x306   : > { %2468 = verf.f32 %v652_v49  ;;  %v654_v54 = vmul.f32 0.70710677, %v644_v50  ;;  %v650_v63 = vmul.f32 0.5, %v644_v50  ;;  %v2431_v45 = vld [vmem:[#allocation10 + $0x1ec] ss:$16 sps:$4 sm:$0xff]   ;;  %1355 = vmatprep.subr.bf16.mxu0 %v2428_v44 }
 0x307   : > { %2470 = verf.f32 %v653_v52  ;;  %v655_v55 = vmul.f32 0.70710677, %v646_v53  ;;  %v651_v2 = vmul.f32 0.5, %v646_v53  ;;  %v2429_v47 = vld [vmem:[#allocation10 + $0x1e8] ss:$16 sps:$4 sm:$0xff]  }
 0x308   : > { %2472 = verf.f32 %v654_v54  ;;  %v702_v49 = vld [vmem:[%s3169_s5] sm:$0x3] }
 0x309   : > { %2474 = verf.f32 %v655_v55  ;;  %1356 = vmatpush1.bf16.msra.mxu0 %v2426_v46  ;;  %v707_v50 = vrot.slane %v702_v49, %v3087_v39  ;;  %v711_v52 = vrot.slane %v702_v49, %v3093_v41 }
 0x30a   : > { %2113 = vmatprep.subr.bf16.mxu0 %v2432_v48 }
 0x310   : > { %v2469_v56 = vpop.eup %2468 }
 0x311   : > { %v2471_v57 = vpop.eup %2470  ;;  %v660_v58 = vadd.f32 1.0, %v2469_v56 }
 0x312   : > { %v2473_v59 = vpop.eup %2472  ;;  %v661_v60 = vadd.f32 1.0, %v2471_v57 }
 0x313   : > { %v2475_v61 = vpop.eup %2474  ;;  %v662_v0 = vadd.f32 1.0, %v2473_v59  ;;  %v664_v4 = vmul.f32 %v660_v58, %v648_v62  ;;  %v2433_v62 = vld [vmem:[#allocation11] sm:$0xff]  }
 0x314   : > { %v663_v3 = vadd.f32 1.0, %v2475_v61  ;;  %v665_v6 = vmul.f32 %v661_v60, %v649_v1  ;;  %v2436_v1 = vld [vmem:[#allocation11 + $0x50] sm:$0xff]  }
 0x315   : > { %v666_v5 = vmul.f32 %v662_v0, %v650_v63  ;;  %v2434_v63 = vld [vmem:[#allocation11 + $0x48] sm:$0xff]  }
 0x316   : > { %v667_v7 = vmul.f32 %v663_v3, %v651_v2  ;;  %v2435_v0 = vld [vmem:[#allocation11 + $0x8] sm:$0xff]   ;;  %v2437_v2 = vld [vmem:[#allocation11 + $0x10] sm:$0xff]   ;;  %v2438_v3 = vld [vmem:[#allocation11 + $0x58] sm:$0xff]  }
 0x317   : > { %v668_v8 = vpack.c.bf16 %v666_v5, %v664_v4  ;;  %v2439_v4 = vld [vmem:[#allocation11 + $0x18] sm:$0xff]   ;;  %v2440_v5 = vld [vmem:[#allocation11 + $0x60] sm:$0xff]  }
 0x318   : > { %v669_v9 = vpack.c.bf16 %v667_v7, %v665_v6  ;;  %v2441_v6 = vld [vmem:[#allocation11 + $0x20] sm:$0xff]   ;;  %v2442_v7 = vld [vmem:[#allocation11 + $0x68] sm:$0xff]  }
 0x31a   : > { %906 = vmatprep.mubr.bf16.mxu1 %v669_v9  ;;  %v2444_v9 = vld [vmem:[#allocation11 + $0x70] sm:$0xff]  }
 0x31b   : > { %907 = vmatmul.mubr.bf16.vlgmr.msra.gmra.mrb[4].mxu1 %v668_v8  ;;  %v2443_v8 = vld [vmem:[#allocation11 + $0x28] sm:$0xff]  }
 0x31c   : > { %1369 = vmatpush1.bf16.msra.mxu1 %v2339_v10  ;;  %v2445_v10 = vld [vmem:[#allocation11 + $0x30] sm:$0xff]  }
 0x31d   : > { %1370 = vmatprep.subr.bf16.mxu1 %v2347_v11  ;;  %v2446_v11 = vld [vmem:[#allocation11 + $0x78] sm:$0xff]  }
 0x320   : > { %1371 = vmatpush1.bf16.msra.mxu1 %v2345_v12  ;;  %v2447_v12 = vld [vmem:[#allocation11 + $0x38] sm:$0xff]  }
 0x321   : > { %1372 = vmatprep.subr.bf16.mxu1 %v2353_v13  ;;  %v2448_v13 = vld [vmem:[#allocation11 + $0xc0] sm:$0xff]  }
 0x324   : > { %1373 = vmatpush1.bf16.msra.mxu1 %v2351_v14  ;;  %v995_v14 = vsub.s32 2, %v3084_v38 }
 0x325   : > { %1374 = vmatprep.subr.bf16.mxu1 %v2359_v15  ;;  %v983_v15 = vld [vmem:[%s3171_s7] sm:$0xf] }
 0x328   : > { %1375 = vmatpush1.bf16.msra.mxu1 %v2357_v16  ;;  %v999_v16 = vsub.s32 3, %v3084_v38 }
 0x329   : > { %1376 = vmatprep.subr.bf16.mxu1 %v2365_v17  ;;  %v988_v17 = vrot.slane %v983_v15, %v3087_v39 }
 0x32c   : > { %1377 = vmatpush1.bf16.msra.mxu1 %v2363_v18  ;;  %v996_v18 = vrot.slane %v983_v15, %v995_v14 }
 0x32d   : > { %1378 = vmatprep.subr.bf16.mxu1 %v2371_v19  ;;  %v992_v19 = vrot.slane %v983_v15, %v3093_v41 }
 0x330   : > { %1379 = vmatpush1.bf16.msra.mxu1 %v2369_v20  ;;  %v1000_v20 = vrot.slane %v983_v15, %v999_v16  ;;  %v2449_v16 = vld [vmem:[#allocation11 + $0x80] sm:$0xff]  }
 0x331   : > { %1380 = vmatprep.subr.bf16.mxu1 %v2377_v21 }
 0x334   : > { %1381 = vmatpush1.bf16.msra.mxu1 %v2375_v22 }
 0x335   : > { %1382 = vmatprep.subr.bf16.mxu1 %v2383_v23 }
 0x338   : > { %1383 = vmatpush1.bf16.msra.mxu1 %v2381_v24 }
 0x339   : > { %1384 = vmatprep.subr.bf16.mxu1 %v2389_v25 }
 0x33c   : > { %1385 = vmatpush1.bf16.msra.mxu1 %v2387_v26 }
 0x33d   : > { %1386 = vmatprep.subr.bf16.mxu1 %v2395_v27 }
 0x340   : > { %1387 = vmatpush1.bf16.msra.mxu1 %v2393_v28 }
 0x341   : > { %1388 = vmatprep.subr.bf16.mxu1 %v2401_v29 }
 0x344   : > { %1389 = vmatpush1.bf16.msra.mxu1 %v2399_v30 }
 0x345   : > { %1390 = vmatprep.subr.bf16.mxu1 %v2407_v31 }
 0x348   : > { %1391 = vmatpush1.bf16.msra.mxu1 %v2405_v32 }
 0x349   : > { %1392 = vmatprep.subr.bf16.mxu1 %v2413_v33 }
 0x34c   : > { %1393 = vmatpush1.bf16.msra.mxu1 %v2411_v34 }
 0x34d   : > { %1394 = vmatprep.subr.bf16.mxu1 %v2419_v35 }
 0x350   : > { %1395 = vmatpush1.bf16.msra.mxu1 %v2417_v36 }
 0x351   : > { %1396 = vmatprep.subr.bf16.mxu1 %v2425_v40 }
 0x354   : > { %1397 = vmatpush1.bf16.msra.mxu1 %v2423_v43 }
 0x355   : > { %1398 = vmatprep.subr.bf16.mxu1 %v2431_v45 }
 0x358   : > { %1399 = vmatpush1.bf16.msra.mxu1 %v2429_v47 }
 0x3ee   : > { %v908_v51 = vpop.f32.mrb[4].mxu1 }
 0x3ef   : > { %v910_v53 = vpop.f32.mrb[5].mxu1  ;;  %v909_v55 = vadd.f32 %v908_v51, %v707_v50 }
 0x3f0   : > { %v912_v54 = vpop.f32.mrb[6].mxu1  ;;  %v911_v58 = vadd.f32 %v910_v53, %v711_v52 }
 0x3f1   : > { %v913_v56 = vadd.f32 %v912_v54, %v707_v50  ;;  %v914_v57 = vpop.f32.mrb[7].mxu1 }
 0x3f2   : > { %v915_v59 = vadd.f32 %v914_v57, %v711_v52 }
 0x3f3   : > { %v917_v60 = vpack.c.bf16 %v913_v56, %v909_v55 }
 0x3f4   : > { %v918_v61 = vpack.c.bf16 %v915_v59, %v911_v58 }
 0x3f6   : > { %1357 = vmatprep.mubr.bf16.mxu0 %v918_v61  ;;  %1400 = vmatprep.mubr.bf16.mxu1 %v918_v61 }
 0x3f7   : > { %1358 = vmatmul.mubr.bf16.vlgmr.msra.gmra.mrb[4].mxu0 %v917_v60  ;;  %1401 = vmatmul.mubr.bf16.vlgmr.msra.gmra.mrb[8].mxu1 %v917_v60 }
 0x3f8   : > { %2114 = vmatpush3.bf16.msra.mxu0 %v2433_v62 }
 0x3f9   : > { %2115 = vmatprep.subr.bf16.mxu0 %v2434_v63 }
 0x3fc   : > { %2116 = vmatpush3.bf16.msra.mxu0 %v2435_v0 }
 0x3fd   : > { %2117 = vmatprep.subr.bf16.mxu0 %v2436_v1 }
 0x400   : > { %2118 = vmatpush3.bf16.msra.mxu0 %v2437_v2 }
 0x401   : > { %2119 = vmatprep.subr.bf16.mxu0 %v2438_v3 }
 0x404   : > { %2120 = vmatpush3.bf16.msra.mxu0 %v2439_v4 }
 0x405   : > { %2121 = vmatprep.subr.bf16.mxu0 %v2440_v5 }
 0x408   : > { %2122 = vmatpush3.bf16.msra.mxu0 %v2441_v6 }
 0x409   : > { %2123 = vmatprep.subr.bf16.mxu0 %v2442_v7 }
 0x40c   : > { %2124 = vmatpush3.bf16.msra.mxu0 %v2443_v8 }
 0x40d   : > { %2125 = vmatprep.subr.bf16.mxu0 %v2444_v9 }
 0x410   : > { %2126 = vmatpush3.bf16.msra.mxu0 %v2445_v10 }
 0x411   : > { %2127 = vmatprep.subr.bf16.mxu0 %v2446_v11 }
 0x414   : > { %2128 = vmatpush3.bf16.msra.mxu0 %v2447_v12 }
 0x415   : > { %2135 = vmatprep.subr.bf16.mxu0 %v2448_v13 }
 0x4ca   : > { %v1359_v21 = vpop.f32.mrb[4].mxu0  ;;  %v1402_v22 = vpop.f32.mrb[8].mxu1 }
 0x4cb   : > { %v1360_v23 = vadd.f32 %v1359_v21, %v988_v17  ;;  %v1403_v24 = vadd.f32 %v1402_v22, %v996_v18  ;;  %v1361_v25 = vpop.f32.mrb[5].mxu0  ;;  %v1404_v26 = vpop.f32.mrb[9].mxu1  ;;  %v2453_v21 = vld [vmem:[#allocation11 + $0x90] sm:$0xff]   ;;  %v2454_v22 = vld [vmem:[#allocation11 + $0xd8] sm:$0xff]  }
 0x4cc   : > { %v1362_v27 = vadd.f32 %v1361_v25, %v992_v19  ;;  %v1405_v28 = vadd.f32 %v1404_v26, %v1000_v20  ;;  %v1363_v29 = vpop.f32.mrb[6].mxu0  ;;  %v1406_v30 = vpop.f32.mrb[10].mxu1  ;;  %v2457_v25 = vld [vmem:[#allocation11 + $0xa0] sm:$0xff]   ;;  %v2458_v26 = vld [vmem:[#allocation11 + $0xe8] sm:$0xff]  }
 0x4cd   : > { %v1419_v31 = vmul.f32 0.70710677, %v1360_v23  ;;  %v1421_v32 = vmul.f32 0.70710677, %v1403_v24  ;;  %v1364_v39 = vadd.f32 %v1363_v29, %v988_v17  ;;  %v1407_v34 = vadd.f32 %v1406_v30, %v996_v18  ;;  %v1365_v35 = vpop.f32.mrb[7].mxu0  ;;  %v1408_v41 = vpop.f32.mrb[11].mxu1 }
 0x4ce   : > { %v1420_v33 = vmul.f32 0.70710677, %v1362_v27  ;;  %v1422_v38 = vmul.f32 0.70710677, %v1405_v28  ;;  %v1366_v36 = vadd.f32 %v1365_v35, %v992_v19  ;;  %v1409_v37 = vadd.f32 %v1408_v41, %v1000_v20  ;;  %v2450_v18 = vld [vmem:[#allocation11 + $0xc8] sm:$0xff]   ;;  %v2452_v20 = vld [vmem:[#allocation11 + $0xd0] sm:$0xff]  }
 0x4cf   : > { %2476 = verf.f32 %v1419_v31  ;;  %v1423_v40 = vmul.f32 0.70710677, %v1364_v39  ;;  %v1425_v42 = vmul.f32 0.70710677, %v1407_v34  ;;  %v1411_v51 = vmul.f32 0.5, %v1360_v23  ;;  %v2451_v19 = vld [vmem:[#allocation11 + $0x88] sm:$0xff]  }
 0x4d0   : > { %2478 = verf.f32 %v1421_v32  ;;  %v1424_v43 = vmul.f32 0.70710677, %v1366_v36  ;;  %v1426_v44 = vmul.f32 0.70710677, %v1409_v37  ;;  %v1413_v52 = vmul.f32 0.5, %v1403_v24  ;;  %v2455_v23 = vld [vmem:[#allocation11 + $0x98] sm:$0xff]  }
 0x4d1   : > { %2480 = verf.f32 %v1420_v33  ;;  %v1412_v55 = vmul.f32 0.5, %v1362_v27  ;;  %v1415_v57 = vmul.f32 0.5, %v1364_v39  ;;  %v1414_v60 = vmul.f32 0.5, %v1405_v28  ;;  %v2456_v24 = vld [vmem:[#allocation11 + $0xe0] sm:$0xff]   ;;  %v2459_v27 = vld [vmem:[#allocation11 + $0xa8] sm:$0xff]   ;;  %v2460_v28 = vld [vmem:[#allocation11 + $0xf0] sm:$0xff]  }
 0x4d2   : > { %2482 = verf.f32 %v1422_v38  ;;  %v1417_v62 = vmul.f32 0.5, %v1407_v34  ;;  %v1416_v3 = vmul.f32 0.5, %v1366_v36  ;;  %v1418_v7 = vmul.f32 0.5, %v1409_v37  ;;  %v2461_v29 = vld [vmem:[#allocation11 + $0xb0] sm:$0xff]   ;;  %v2462_v30 = vld [vmem:[#allocation11 + $0xf8] sm:$0xff]  }
 0x4d3   : > { %2484 = verf.f32 %v1423_v40  ;;  %v2463_v31 = vld [vmem:[#allocation11 + $0xb8] sm:$0xff]   ;;  %v2068_v41 = vld [vmem:[%s3204_s10] ss:$0 sm:$0xff] }
 0x4d4   : > { %2486 = verf.f32 %v1425_v42 }
 0x4d5   : > { %2488 = verf.f32 %v1424_v43 }
 0x4d6   : > { %2490 = verf.f32 %v1426_v44 }
 0x4d9   : > { %v2477_v45 = vpop.eup %2476 }
 0x4da   : > { %v2479_v46 = vpop.eup %2478  ;;  %v1435_v49 = vadd.f32 1.0, %v2477_v45 }
 0x4db   : > { %v2481_v47 = vpop.eup %2480  ;;  %v1437_v53 = vadd.f32 1.0, %v2479_v46 }
 0x4dc   : > { %v2483_v48 = vpop.eup %2482  ;;  %v1436_v56 = vadd.f32 1.0, %v2481_v47  ;;  %v1443_v1 = vmul.f32 %v1435_v49, %v1411_v51 }
 0x4dd   : > { %v2485_v50 = vpop.eup %2484  ;;  %v1438_v61 = vadd.f32 1.0, %v2483_v48  ;;  %v1445_v5 = vmul.f32 %v1437_v53, %v1413_v52 }
 0x4de   : > { %v2487_v54 = vpop.eup %2486  ;;  %v1439_v58 = vadd.f32 1.0, %v2485_v50  ;;  %v1444_v9 = vmul.f32 %v1436_v56, %v1412_v55 }
 0x4df   : > { %v2489_v59 = vpop.eup %2488  ;;  %v1441_v63 = vadd.f32 1.0, %v2487_v54  ;;  %v1446_v12 = vmul.f32 %v1438_v61, %v1414_v60 }
 0x4e0   : > { %v2491_v0 = vpop.eup %2490  ;;  %v1447_v2 = vmul.f32 %v1439_v58, %v1415_v57  ;;  %v1440_v4 = vadd.f32 1.0, %v2489_v59 }
 0x4e1   : > { %v1449_v6 = vmul.f32 %v1441_v63, %v1417_v62  ;;  %v1442_v8 = vadd.f32 1.0, %v2491_v0 }
 0x4e2   : > { %v1451_v10 = vpack.c.bf16 %v1447_v2, %v1443_v1  ;;  %v1448_v11 = vmul.f32 %v1440_v4, %v1416_v3 }
 0x4e3   : > { %v1453_v13 = vpack.c.bf16 %v1449_v6, %v1445_v5  ;;  %v1450_v14 = vmul.f32 %v1442_v8, %v1418_v7 }
 0x4e4   : > { %v1452_v15 = vpack.c.bf16 %v1448_v11, %v1444_v9 }
 0x4e5   : > { %v1454_v17 = vpack.c.bf16 %v1450_v14, %v1446_v12 }
 0x4e6   : > { %1750 = vmatprep.mubr.bf16.mxu0 %v1452_v15 }
 0x4e7   : > { %1751 = vmatmul.mubr.bf16.vlgmr.msra.gmra.mrb[8].mxu0 %v1451_v10 }
 0x4e8   : > { %2136 = vmatpush3.bf16.msra.mxu0 %v2449_v16  ;;  %1791 = vmatprep.mubr.bf16.mxu0 %v1454_v17 }
 0x4e9   : > { %2137 = vmatprep.subr.bf16.mxu0 %v2450_v18 }
 0x4ec   : > { %2138 = vmatpush3.bf16.msra.mxu0 %v2451_v19 }
 0x4ed   : > { %2139 = vmatprep.subr.bf16.mxu0 %v2452_v20 }
 0x4f0   : > { %2140 = vmatpush3.bf16.msra.mxu0 %v2453_v21 }
 0x4f1   : > { %2141 = vmatprep.subr.bf16.mxu0 %v2454_v22 }
 0x4f4   : > { %2142 = vmatpush3.bf16.msra.mxu0 %v2455_v23 }
 0x4f5   : > { %2143 = vmatprep.subr.bf16.mxu0 %v2456_v24 }
 0x4f8   : > { %2144 = vmatpush3.bf16.msra.mxu0 %v2457_v25 }
 0x4f9   : > { %2145 = vmatprep.subr.bf16.mxu0 %v2458_v26 }
 0x4fc   : > { %2146 = vmatpush3.bf16.msra.mxu0 %v2459_v27 }
 0x4fd   : > { %2147 = vmatprep.subr.bf16.mxu0 %v2460_v28 }
 0x500   : > { %2148 = vmatpush3.bf16.msra.mxu0 %v2461_v29 }
 0x501   : > { %2149 = vmatprep.subr.bf16.mxu0 %v2462_v30 }
 0x504   : > { %2150 = vmatpush3.bf16.msra.mxu0 %v2463_v31 }
 0x507   : > { %1792 = vmatmul.mubr.bf16.vlgmr.msra.gmra.mrb[12].mxu0 %v1453_v13 }
 0x5ba   : > { %v2129_v32 = vpop.f32.mrb[8].mxu0 }
 0x5bb   : > { %v2130_v33 = vpop.f32.mrb[9].mxu0 }
 0x5bc   : > { %v2131_v38 = vadd.f32 %v2130_v33, %v2129_v32  ;;  %v2132_v39 = vpop.f32.mrb[10].mxu0 }
 0x5bd   : > { %v2133_v34 = vpop.f32.mrb[11].mxu0 }
 0x5be   : > { %v2134_v35 = vadd.f32 %v2133_v34, %v2132_v39  ;;  %v1753_v40 = vadd.f32 %v2131_v38, %v2068_v41 }
 0x5c0   : > { %v1756_v45 = vadd.f32 %v2134_v35, %v2068_v41 }
 0x5da   : > { %v2151_v36 = vpop.f32.mrb[12].mxu0 }
 0x5db   : > { %v2152_v37 = vpop.f32.mrb[13].mxu0 }
 0x5dc   : > { %v2153_v42 = vadd.f32 %v2152_v37, %v2151_v36  ;;  %v2154_v43 = vpop.f32.mrb[14].mxu0 }
 0x5dd   : > { %v2155_v44 = vpop.f32.mrb[15].mxu0 }
 0x5de   : > { %v1794_v46 = vadd.f32 %v2153_v42, %v1753_v40  ;;  %v2156_v47 = vadd.f32 %v2155_v44, %v2154_v43 }
 0x5e0   : > { %2492 = vtanh.f32 %v1794_v46  ;;  %v1797_v48 = vadd.f32 %v2156_v47, %v1756_v45 }
 0x5e2   : > { %2494 = vtanh.f32 %v1797_v48 }
 0x5ea   : > { %v2493_v49 = vpop.eup %2492 }
 0x5eb   : > { %v1802_v50 = vmul.f32 1.25, %v2493_v49 }
 0x5ec   : > { %v2495_v51 = vpop.eup %2494 }
 0x5ed   : > { %v1804_v52 = vadd.f32 0.75, %v1802_v50  ;;  %v1803_v53 = vmul.f32 1.25, %v2495_v51 }
 0x5ef   : > { %1806 = vst [vmem:[%s450_s21] sm:$0xff] %v1804_v52  ;;  %v1805_v54 = vadd.f32 0.75, %v1803_v53 }
 0x5f1   : > { %1807 = vst [vmem:[%s450_s21 + $0x8] sm:$0xff] %v1805_v54 }
 0x5f2   : > { %2679 = shalt.err (!%p2676_p8)
}
 0x5f3   : > { %s2680_s10 = scalar_lea.hbm %s3118_s25, 256  ;;  %s2684_s24 = scalar_lea.hbm %s3205_s26, 512 }
 0x5f4   : > { %p2681_p6 = scmp.ne.s32.totalorder %s3118_s25, %s2680_s10  ;;  %p2685_p3 = scmp.lt.u32.totalorder %s3118_s25, %s3205_s26 }
 0x5f5   : > { %p2686_p0 = scmp.lt.u32.totalorder %s2684_s24, %s2680_s10  ;;  %p2688_p2 = scmp.lt.u32.totalorder %s2680_s10, %s3118_s25 }
 0x5f6   : > { %p2682_p9 = pnand %p2681_p6, %p3206_p7 }
 0x5f7   : > { %p2687_p5 = por %p2686_p0, %p2685_p3 }
 0x5f8   : > { %p2683_p4 = pneg %p2682_p9 }
 0x5f9   : > { %p2689_p10 = por %p2688_p2, %p2687_p5 }
 0x5fb   : > { %p2690_p1 = pnand %p2689_p10, %p2683_p4 }
 0x5fd   : > { %2693 = shalt.err (!%p2690_p1)
}
 0x5fe   : > { %s2763_s22 = smov 128   ;;  %s2764_s28 = smov 8  }
 0x5ff   : > { %2191 = dma.vmem_to_hbm [thread:$0]  (%p3206_p7), %s3120_s20, 256, %s3118_s25, %s1809_s23, %s2763_s22, %s2763_s22, %s2764_s28  }
 0x600 PF: > { %s1837_s29 = sand.u32 1, %s2732_s13   ;;  %p3207_p11 = scmp.ne.s32.totalorder %s3193_s18, 0 }
 0x601   : > { %p3208_p12 = scmp.ge.s32.totalorder %s2744_s16, 2  ;;  %s1838_s10 = scalar_lea.sflag [#allocation4], %s1837_s29 }
 0x603   : > { %p2214_p13 = pnand %p3208_p12, %p3207_p11 }
 0x605   : > { %2727 = dma.done.wait (!%p2214_p13), %s1838_s10, 256  }
 0x606   : > { %2729 = vsyncadd (!%p2214_p13), %s1838_s10, 4294967040  ;;  %p26_p8 = scmp.ge.s32.totalorder %s2986_s11, 4   ;;  %s3209_s13 = smov %s2736_s14 }
 0x607   : > { %s3210_s14 = smov %s2740_s15  ;;  %s3211_s15 = smov %s2998_s30 }
 0x608   : > { %s3212_s16 = smov %s2986_s11  ;;  %28 = sbr.rel (!%p26_p8) target bundleno = 11 (0xb), region = 125 }
 0x60f   :  { %1843 = vsyncpa [#allocation3], 1 }
 0x610   :  { %1845 = vsyncpa [#allocation3 + $0x1], 1 }
 0x611   :  { %1846 = vsyncpa [#allocation6], 1 }
 0x612   :  { %1847 = vsyncpa [#allocation9], 1 }
 0x613   :  { %1848 = vsyncpa [#allocation12], 1 }
 0x614   :  { %1849 = vsyncpa [#allocation4], 1 }
 0x615   :  { %1851 = vsyncpa [#allocation4 + $0x1], 1 }

</bundles_post_ra>
